<compile_context>
chip_gen: v7x
topology: tpu7x:2x2x1
jax: 0.10.0
libtpu: 0.0.40
codegen_flags: <defaults>
</compile_context>

<pallas_src>
import functools

import jax
import jax.numpy as jnp
from jax.experimental import pallas as pl
from jax.experimental.pallas import tpu as pltpu


def conv_relu_stats_kernel(x_ref, w_ref, b_ref, y_ref, ps_ref):
    # x_ref : (1, H+2, W+2, Cin)  padded NHWC image for this grid step
    # w_ref : (9*Cin, Cout)       conv weights, row = (kh*3 + kw)*Cin + ci
    # b_ref : (1, Cout)           conv bias
    # y_ref : (1, H, W, Cout)     conv + bias + ReLU output (pre-BN)
    # ps_ref: (1, 2, Cout)        per-image BN partial stats: [sum, sum_of_squares]
    _, _, _, Cin = x_ref.shape
    _, H, W, Cout = y_ref.shape

    # im2col: the 9 shifted (H, W, Cin) slices, flattened to (H*W, Cin) and concatenated
    # along the channel (lane) axis -> a single MXU matmul instead of 9*Cin VPU FMAs.
    cols = []
    for kh in range(3):
        for kw in range(3):
            cols.append(x_ref[:, kh:kh + H, kw:kw + W, :].reshape(H * W, Cin))
    patches = jnp.concatenate(cols, axis=-1)                        # (H*W, 9*Cin)

    acc = jnp.dot(patches, w_ref[...], preferred_element_type=jnp.float32)
    acc = jnp.maximum(acc + b_ref[...], 0.0)                        # (H*W, Cout)

    y_ref[...] = acc.reshape(1, H, W, Cout)

    # Fused BN batch statistics while acc is live (cross-sublane reductions -> XLU slot).
    s = jnp.sum(acc, axis=0, keepdims=True)                         # (1, Cout)
    sq = jnp.sum(acc * acc, axis=0, keepdims=True)                  # (1, Cout)
    ps_ref[...] = jnp.concatenate([s, sq], axis=0).reshape(1, 2, Cout)


def bn_pool_kernel(y_ref, stats_ref, g_ref, beta_ref, o_ref, *, inv_count):
    # y_ref    : (1, H, W, Cout)    conv + ReLU output for this image
    # stats_ref: (2, Cout)          [sum, sum_sq] over the whole batch
    # g_ref    : (1, Cout)          BN gamma
    # beta_ref : (1, Cout)          BN beta
    # o_ref    : (1, Hh, Wh, Cout)  pooled output
    _, H, W, Cout = y_ref.shape
    _, Hh, Wh, _ = o_ref.shape

    mean = stats_ref[0:1, :] * inv_count                            # (1, Cout)
    var = stats_ref[1:2, :] * inv_count - mean * mean               # biased (training mode)
    scale = g_ref[...] * jax.lax.rsqrt(var + 1e-5)                  # (1, Cout)
    shift = beta_ref[...] - mean * scale

    # Normalize (before pooling, so any sign of gamma is handled exactly), then pool:
    #   W axis: strided ref loads of even/odd columns + one jnp.maximum.
    #   H axis: split the (major) H dim and reduce -> stays in vregs, single store.
    even = y_ref[:, :, pl.ds(0, Wh, stride=2), :] * scale + shift   # (1, H, Wh, Cout)
    odd = y_ref[:, :, pl.ds(1, Wh, stride=2), :] * scale + shift    # (1, H, Wh, Cout)
    pooled_w = jnp.maximum(even, odd)                               # (1, H, Wh, Cout)
    o_ref[...] = jnp.max(pooled_w.reshape(1, Hh, 2, Wh, Cout), axis=2)


def conv_pool(x_nchw, w_oihw, bias, gamma, beta):
    """Pallas ConvPool. x_nchw: (N, Cin, H, W) f32 -> (N, Cout, H//2, W//2) f32."""
    N, Cin, H, W = x_nchw.shape
    Cout = w_oihw.shape[0]
    Hh, Wh = H // 2, W // 2
    assert H % 2 == 0 and W % 2 == 0, "MaxPool2d(2,2) path assumes even H and W"

    # Layout glue (plain JAX). For production, keep activations NHWC end-to-end instead.
    x_nhwc = jnp.transpose(x_nchw, (0, 2, 3, 1)).astype(jnp.float32)
    x_pad = jnp.pad(x_nhwc, ((0, 0), (1, 1), (1, 1), (0, 0)))
    w_flat = jnp.transpose(w_oihw, (2, 3, 1, 0)).reshape(9 * Cin, Cout).astype(jnp.float32)
    b2 = bias.reshape(1, Cout).astype(jnp.float32)
    g2 = gamma.reshape(1, Cout).astype(jnp.float32)
    be2 = beta.reshape(1, Cout).astype(jnp.float32)

    # ---- Pass 1: conv (MXU) + bias + ReLU, fused per-image BN partial stats ----
    y, pstats = pl.pallas_call(
        conv_relu_stats_kernel,
        grid=(N,),
        in_specs=[
            pl.BlockSpec((1, H + 2, W + 2, Cin), lambda n: (n, 0, 0, 0)),
            pl.BlockSpec((9 * Cin, Cout), lambda n: (0, 0)),
            pl.BlockSpec((1, Cout), lambda n: (0, 0)),
        ],
        out_specs=(
            pl.BlockSpec((1, H, W, Cout), lambda n: (n, 0, 0, 0)),
            pl.BlockSpec((1, 2, Cout), lambda n: (n, 0, 0)),
        ),
        out_shape=(
            jax.ShapeDtypeStruct((N, H, W, Cout), jnp.float32),
            jax.ShapeDtypeStruct((N, 2, Cout), jnp.float32),
        ),
        compiler_params=pltpu.CompilerParams(dimension_semantics=("parallel",)),
    )(x_pad, w_flat, b2)

    # Tiny (N, 2, Cout) reduction of the partial stats in XLA keeps both passes "parallel".
    stats = jnp.sum(pstats, axis=0)                                  # (2, Cout)

    # ---- Pass 2: normalize with batch stats + vectorized 2x2 max-pool ----
    inv_count = 1.0 / float(N * H * W)
    out_nhwc = pl.pallas_call(
        functools.partial(bn_pool_kernel, inv_count=inv_count),
        grid=(N,),
        in_specs=[
            pl.BlockSpec((1, H, W, Cout), lambda n: (n, 0, 0, 0)),
            pl.BlockSpec((2, Cout), lambda n: (0, 0)),
            pl.BlockSpec((1, Cout), lambda n: (0, 0)),
            pl.BlockSpec((1, Cout), lambda n: (0, 0)),
        ],
        out_specs=pl.BlockSpec((1, Hh, Wh, Cout), lambda n: (n, 0, 0, 0)),
        out_shape=jax.ShapeDtypeStruct((N, Hh, Wh, Cout), jnp.float32),
        compiler_params=pltpu.CompilerParams(dimension_semantics=("parallel",)),
    )(y, stats, g2, be2)

    return jnp.transpose(out_nhwc, (0, 3, 1, 2))


def ref_conv_pool(x, w, b, gamma, beta):
    """Pure-JAX reference matching PyTorch ConvPool.forward (BN in training mode)."""
    y = jax.lax.conv_general_dilated(
        x, w, window_strides=(1, 1), padding=((1, 1), (1, 1)),
        dimension_numbers=("NCHW", "OIHW", "NCHW"))
    y = y + b[None, :, None, None]
    y = jnp.maximum(y, 0.0)
    mean = jnp.mean(y, axis=(0, 2, 3), keepdims=True)
    var = jnp.mean((y - mean) ** 2, axis=(0, 2, 3), keepdims=True)
    y = (y - mean) * jax.lax.rsqrt(var + 1e-5) * gamma[None, :, None, None] \
        + beta[None, :, None, None]
    N, C, H, W = y.shape
    return y.reshape(N, C, H // 2, 2, W // 2, 2).max(axis=(3, 5))


if __name__ == "__main__":
    key = jax.random.PRNGKey(0)
    kx, kw, kb, kg, kbe = jax.random.split(key, 5)

    N, Cin, Cout, H, W = 2, 4, 8, 16, 16
    x = jax.random.normal(kx, (N, Cin, H, W), dtype=jnp.float32)

    # Deterministic parameters (shapes match torch.nn.Conv2d / BatchNorm2d). gamma/beta are
    # perturbed from the torch defaults (ones/zeros) so the BN affine path is exercised.
    w = 0.1 * jax.random.normal(kw, (Cout, Cin, 3, 3), dtype=jnp.float32)
    b = 0.1 * jax.random.normal(kb, (Cout,), dtype=jnp.float32)
    gamma = 1.0 + 0.1 * jax.random.normal(kg, (Cout,), dtype=jnp.float32)
    beta = 0.1 * jax.random.normal(kbe, (Cout,), dtype=jnp.float32)
    # TODO(synk): BatchNorm running_mean/var tracking (training-state side effect) is not
    # modeled; only the forward output (batch statistics) is reproduced.

    out = jax.block_until_ready(conv_pool(x, w, b, gamma, beta))
    ref = jax.block_until_ready(ref_conv_pool(x, w, b, gamma, beta))

    assert out.shape == (N, Cout, H // 2, W // 2), out.shape
    err = float(jnp.max(jnp.abs(out - ref)))
    assert jnp.allclose(out, ref, rtol=1e-3, atol=2e-3), err
    print("KERNEL_OK")
</pallas_src>

<mosaic_0001>
module attributes {stable_mosaic.version = 11 : i64} {
  func.func @conv_relu_stats_kernel(%arg0: i32, %arg1: memref<1x18x18x4xf32, #tpu.memory_space<vmem>>, %arg2: memref<36x8xf32, #tpu.memory_space<vmem>>, %arg3: memref<1x8xf32, #tpu.memory_space<vmem>>, %arg4: memref<1x16x16x8xf32, #tpu.memory_space<vmem>>, %arg5: memref<1x2x8xf32, #tpu.memory_space<vmem>>) attributes {dimension_semantics = [#tpu.dimension_semantics<parallel>], iteration_bounds = array<i64: 2>, scalar_prefetch = 0 : i64, scratch_operands = 0 : i64, tpu.core_type = #tpu.core_type<tc>, window_params = [{transform_indices = @transform_0, window_bounds = array<i64: 1, 18, 18, 4>}, {pipeline_mode = #tpu.pipeline_mode<synchronous>, transform_indices = @transform_1, window_bounds = array<i64: 36, 8>}, {pipeline_mode = #tpu.pipeline_mode<synchronous>, transform_indices = @transform_2, window_bounds = array<i64: 1, 8>}, {transform_indices = @transform_3, window_bounds = array<i64: 1, 16, 16, 8>}, {transform_indices = @transform_4, window_bounds = array<i64: 1, 2, 8>}]} {
    %c0 = arith.constant 0 : index
    %c0_0 = arith.constant 0 : index
    %c0_1 = arith.constant 0 : index
    %c0_2 = arith.constant 0 : index
    %0 = vector.load %arg1[%c0, %c0_0, %c0_1, %c0_2] : memref<1x18x18x4xf32, #tpu.memory_space<vmem>>, vector<1x16x16x4xf32>
    %1 = vector.shape_cast %0 : vector<1x16x16x4xf32> to vector<256x4xf32>
    %c0_3 = arith.constant 0 : index
    %c0_4 = arith.constant 0 : index
    %c1 = arith.constant 1 : index
    %c0_5 = arith.constant 0 : index
    %2 = vector.load %arg1[%c0_3, %c0_4, %c1, %c0_5] : memref<1x18x18x4xf32, #tpu.memory_space<vmem>>, vector<1x16x16x4xf32>
    %3 = vector.shape_cast %2 : vector<1x16x16x4xf32> to vector<256x4xf32>
    %c0_6 = arith.constant 0 : index
    %c0_7 = arith.constant 0 : index
    %c2 = arith.constant 2 : index
    %c0_8 = arith.constant 0 : index
    %4 = vector.load %arg1[%c0_6, %c0_7, %c2, %c0_8] : memref<1x18x18x4xf32, #tpu.memory_space<vmem>>, vector<1x16x16x4xf32>
    %5 = vector.shape_cast %4 : vector<1x16x16x4xf32> to vector<256x4xf32>
    %c0_9 = arith.constant 0 : index
    %c1_10 = arith.constant 1 : index
    %c0_11 = arith.constant 0 : index
    %c0_12 = arith.constant 0 : index
    %6 = vector.load %arg1[%c0_9, %c1_10, %c0_11, %c0_12] : memref<1x18x18x4xf32, #tpu.memory_space<vmem>>, vector<1x16x16x4xf32>
    %7 = vector.shape_cast %6 : vector<1x16x16x4xf32> to vector<256x4xf32>
    %c0_13 = arith.constant 0 : index
    %c1_14 = arith.constant 1 : index
    %c1_15 = arith.constant 1 : index
    %c0_16 = arith.constant 0 : index
    %8 = vector.load %arg1[%c0_13, %c1_14, %c1_15, %c0_16] : memref<1x18x18x4xf32, #tpu.memory_space<vmem>>, vector<1x16x16x4xf32>
    %9 = vector.shape_cast %8 : vector<1x16x16x4xf32> to vector<256x4xf32>
    %c0_17 = arith.constant 0 : index
    %c1_18 = arith.constant 1 : index
    %c2_19 = arith.constant 2 : index
    %c0_20 = arith.constant 0 : index
    %10 = vector.load %arg1[%c0_17, %c1_18, %c2_19, %c0_20] : memref<1x18x18x4xf32, #tpu.memory_space<vmem>>, vector<1x16x16x4xf32>
    %11 = vector.shape_cast %10 : vector<1x16x16x4xf32> to vector<256x4xf32>
    %c0_21 = arith.constant 0 : index
    %c2_22 = arith.constant 2 : index
    %c0_23 = arith.constant 0 : index
    %c0_24 = arith.constant 0 : index
    %12 = vector.load %arg1[%c0_21, %c2_22, %c0_23, %c0_24] : memref<1x18x18x4xf32, #tpu.memory_space<vmem>>, vector<1x16x16x4xf32>
    %13 = vector.shape_cast %12 : vector<1x16x16x4xf32> to vector<256x4xf32>
    %c0_25 = arith.constant 0 : index
    %c2_26 = arith.constant 2 : index
    %c1_27 = arith.constant 1 : index
    %c0_28 = arith.constant 0 : index
    %14 = vector.load %arg1[%c0_25, %c2_26, %c1_27, %c0_28] : memref<1x18x18x4xf32, #tpu.memory_space<vmem>>, vector<1x16x16x4xf32>
    %15 = vector.shape_cast %14 : vector<1x16x16x4xf32> to vector<256x4xf32>
    %c0_29 = arith.constant 0 : index
    %c2_30 = arith.constant 2 : index
    %c2_31 = arith.constant 2 : index
    %c0_32 = arith.constant 0 : index
    %16 = vector.load %arg1[%c0_29, %c2_30, %c2_31, %c0_32] : memref<1x18x18x4xf32, #tpu.memory_space<vmem>>, vector<1x16x16x4xf32>
    %17 = vector.shape_cast %16 : vector<1x16x16x4xf32> to vector<256x4xf32>
    %18 = tpu.concatenate %1, %3, %5, %7, %9, %11, %13, %15, %17 in 1 : vector<256x4xf32>, vector<256x4xf32>, vector<256x4xf32>, vector<256x4xf32>, vector<256x4xf32>, vector<256x4xf32>, vector<256x4xf32>, vector<256x4xf32>, vector<256x4xf32> -> vector<256x36xf32>
    %c0_33 = arith.constant 0 : index
    %c0_34 = arith.constant 0 : index
    %19 = vector.load %arg2[%c0_33, %c0_34] : memref<36x8xf32, #tpu.memory_space<vmem>>, vector<36x8xf32>
    %cst = arith.constant dense<0.000000e+00> : vector<256x8xf32>
    %20 = tpu.matmul %18, %19, %cst {dimension_numbers = #tpu.dot_dimension_numbers<[1], [0], [0], [1], [0, 0, 1, 1], [], []>} : vector<256x36xf32>, vector<36x8xf32>, vector<256x8xf32> -> vector<256x8xf32>
    %c0_35 = arith.constant 0 : index
    %c0_36 = arith.constant 0 : index
    %21 = vector.load %arg3[%c0_35, %c0_36] : memref<1x8xf32, #tpu.memory_space<vmem>>, vector<1x8xf32>
    %22 = vector.broadcast %21 : vector<1x8xf32> to vector<256x8xf32>
    %23 = arith.addf %20, %22 : vector<256x8xf32>
    %cst_37 = arith.constant 0.000000e+00 : f32
    %24 = vector.broadcast %cst_37 : f32 to vector<256x8xf32>
    %25 = arith.maximumf %23, %24 : vector<256x8xf32>
    %26 = vector.shape_cast %25 : vector<256x8xf32> to vector<1x16x16x8xf32>
    %c0_38 = arith.constant 0 : index
    %c0_39 = arith.constant 0 : index
    %c0_40 = arith.constant 0 : index
    %c0_41 = arith.constant 0 : index
    %27 = vector.load %arg4[%c0_38, %c0_39, %c0_40, %c0_41] : memref<1x16x16x8xf32, #tpu.memory_space<vmem>>, vector<1x16x16x8xf32>
    tpu.vector_store %arg4[%c0_38, %c0_39, %c0_40, %c0_41], %26 {strides = array<i32>} : memref<1x16x16x8xf32, #tpu.memory_space<vmem>>, vector<1x16x16x8xf32>,
    %cst_42 = arith.constant dense<0.000000e+00> : vector<8xf32>
    %28 = vector.multi_reduction <add>, %25, %cst_42 [0] : vector<256x8xf32> to vector<8xf32>
    %29 = vector.shape_cast %28 : vector<8xf32> to vector<1x8xf32>
    %30 = arith.mulf %25, %25 : vector<256x8xf32>
    %cst_43 = arith.constant dense<0.000000e+00> : vector<8xf32>
    %31 = vector.multi_reduction <add>, %30, %cst_43 [0] : vector<256x8xf32> to vector<8xf32>
    %32 = vector.shape_cast %31 : vector<8xf32> to vector<1x8xf32>
    %33 = tpu.concatenate %29, %32 in 0 : vector<1x8xf32>, vector<1x8xf32> -> vector<2x8xf32>
    %34 = vector.shape_cast %33 : vector<2x8xf32> to vector<1x2x8xf32>
    %c0_44 = arith.constant 0 : index
    %c0_45 = arith.constant 0 : index
    %c0_46 = arith.constant 0 : index
    %35 = vector.load %arg5[%c0_44, %c0_45, %c0_46] : memref<1x2x8xf32, #tpu.memory_space<vmem>>, vector<1x2x8xf32>
    tpu.vector_store %arg5[%c0_44, %c0_45, %c0_46], %34 {strides = array<i32>} : memref<1x2x8xf32, #tpu.memory_space<vmem>>, vector<1x2x8xf32>,
    return
  }
  func.func @transform_0(%arg0: i32) -> (i32, i32, i32, i32) {
    %c0_i32 = arith.constant 0 : i32
    %c0_i32_0 = arith.constant 0 : i32
    %c0_i32_1 = arith.constant 0 : i32
    %c0_i32_2 = arith.constant 0 : i32
    return %arg0, %c0_i32, %c0_i32_0, %c0_i32_1 : i32, i32, i32, i32
  }
  func.func @transform_1(%arg0: i32) -> (i32, i32) {
    %c0_i32 = arith.constant 0 : i32
    %c0_i32_0 = arith.constant 0 : i32
    %c0_i32_1 = arith.constant 0 : i32
    return %c0_i32, %c0_i32_0 : i32, i32
  }
  func.func @transform_2(%arg0: i32) -> (i32, i32) {
    %c0_i32 = arith.constant 0 : i32
    %c0_i32_0 = arith.constant 0 : i32
    %c0_i32_1 = arith.constant 0 : i32
    return %c0_i32, %c0_i32_0 : i32, i32
  }
  func.func @transform_3(%arg0: i32) -> (i32, i32, i32, i32) {
    %c0_i32 = arith.constant 0 : i32
    %c0_i32_0 = arith.constant 0 : i32
    %c0_i32_1 = arith.constant 0 : i32
    %c0_i32_2 = arith.constant 0 : i32
    return %arg0, %c0_i32, %c0_i32_0, %c0_i32_1 : i32, i32, i32, i32
  }
  func.func @transform_4(%arg0: i32) -> (i32, i32, i32) {
    %c0_i32 = arith.constant 0 : i32
    %c0_i32_0 = arith.constant 0 : i32
    %c0_i32_1 = arith.constant 0 : i32
    return %arg0, %c0_i32, %c0_i32_0 : i32, i32, i32
  }
}

</mosaic_0001>

<bundles_post_ra>
// kernel: tpu_custom_call.1
= control target key start
LH: loop header
LB: loop body
LE: loop exit
PB: predicated region body
PF: predicated region fallthrough
CT: control target
= control target key end

     0   :  { %10 = vsyncpa [#allocation3], 0  ;;  %s4491_s0 = inlined_call_operand.vmem [shape: f32[2,18,18,4], index: 0, kind: input, shape index: {}]   ;;  %s4492_s1 = inlined_call_operand.vmem [shape: f32[36,8], index: 1, kind: input, shape index: {}]   ;;  %s4493_s2 = inlined_call_operand.vmem [shape: f32[1,8], index: 2, kind: input, shape index: {}]   ;;  %s4494_s3 = inlined_call_operand.vmem [shape: f32[2,16,16,8], index: 3, kind: output, shape index: {0}]   ;;  %s4495_s4 = inlined_call_operand.hbm [shape: f32[2,2,8], index: 4, kind: output, shape index: {1}]  }
   0x1   :  { %12 = vsyncpa [#allocation3 + $0x1], 0  ;;  %s2963_s15 = smov 0   ;;  %s2965_s16 = smov 0  }
   0x2   :  { %s2967_s17 = smov 0   ;;  %s2969_s18 = smov 0  }
   0x3 LB: > { %s2984_s19 = sadd.s32 4294967295, %s2927_s18   ;;  %s2469_s20 = sadd.s32 4294967294, %s2927_s18   ;;  %s2927_s18 = sphi %s2969_s18, %s4598_s18   ;;  %s2923_s17 = sphi %s2967_s17, %s4597_s17   ;;  %s2919_s16 = sphi %s2965_s16, %s4596_s16   ;;  %s2915_s15 = sphi %s2963_s15, %s4595_s15  }
   0x4   : > { %s2988_s21 = sadd.s32 1, %s2927_s18   ;;  %s119_s22 = sadd.s32 1, %s2923_s17 }
   0x5   : > { %s116_s23 = ssub.s32 %s2927_s18, %s2988_s21  ;;  %p129_p0 = scmp.ne.s32.totalorder %s2923_s17, %s2919_s16 }
   0x6   : > { %p117_p1 = scmp.eq.s32.totalorder %s116_s23, 0  ;;  %p130_p2 = scmp.eq.s32.totalorder %s2984_s19, 1 }
   0x7   : > { %p135_p3 = scmp.ne.s32.totalorder %s2919_s16, %s2915_s15  ;;  %p136_p4 = scmp.eq.s32.totalorder %s2469_s20, 1 }
   0x8   : > { %s2999_s24 = scalar_select %p117_p1, %s2923_s17, %s119_s22  }
   0x9   : > { %p3001_p5 = por %p130_p2, %p129_p0  ;;  %p3005_p6 = por %p136_p4, %p135_p3 }
   0xa   : > { %p2472_p7 = scmp.ge.s32.totalorder %s2927_s18, 1  ;;  %p168_p8 = scmp.lt.s32.totalorder %s2927_s18, 3 }
   0xc   : > { %p169_p9 = pnand %p2472_p7, %p168_p8 }
   0xe   : > { %172 = sbr.rel (%p169_p9) target bundleno = 905 (0x389), region = 32 }
  0x15   : > { %p199_p10 = scmp.lt.s32.totalorder %s2984_s19, 1  ;;  %s2929_s6 = smov 4   ;;  %vm1523_vm0 = vcmask 31744   ;;  %vm1896_vm1 = vcmask 1043456   ;;  %vm1556_vm2 = vcmask 64512   ;;  %vm1589_vm3 = vcmask 97280  }
  0x16   : > { %s2930_s7 = smov 8   ;;  %s2931_s8 = smov 12   ;;  %vm1622_vm4 = vcmask 130048   ;;  %vm1655_vm5 = vcmask 162816   ;;  %vm1688_vm6 = vcmask 195584   ;;  %vm1721_vm7 = vcmask 228352  }
  0x17   : > { %s3013_s27 = scalar_select %p199_p10, %s2984_s19, 1  ;;  %vm1754_vm8 = vcmask 261120   ;;  %vm1799_vm9 = vcmask 293888   ;;  %vm2359_vm10 = vcmask 1040384   ;;  %vm2361_vm11 = vcmask 58368  }
  0x18   : > { %s2932_s13 = smov 16   ;;  %s2934_s29 = smov 24  }
  0x19   : > { %s2817_s28 = smul.u32 432, %s3013_s27  ;;  %s2936_s9 = smov 32  }
  0x1a   : > { %s2707_s11 = sshll.u32 %s3013_s27, 8  ;;  %s2704_s20 = sshll.u32 %s2984_s19, 5 }
  0x1b   : > { %s3019_s5 = scalar_lea.vmem %s4491_s0, %s2817_s28  ;;  %s2933_s28 = smov 20  }
  0x1c   : > { %v3022_v0 = vld [vmem:[%s3019_s5 + $0x19] sm:$0xff]  ;;  %v241_v1 = vld [vmem:[%s3019_s5 + $0x1] sm:$0xff]  ;;  %v242_v3 = vld [vmem:[%s3019_s5 + $0x9] sm:$0xff]  ;;  %s4449_s30 = scalar_lea.hbm %s4495_s4, %s2704_s20 }
  0x1d   : > { %535 = vrot.lane.b32.xlu1 %v3022_v0, %s2929_s6  ;;  %531 = vrot.lane.b32.xlu0 %v241_v1, %s2929_s6  ;;  %v3029_v2 = vld [vmem:[%s3019_s5 + $0x21] sm:$0xff]  ;;  %v3036_v4 = vld [vmem:[%s3019_s5 + $0x39] sm:$0xff] }
  0x1e   : > { %v3039_v5 = vld [vmem:[%s3019_s5 + $0x31] sm:$0xff]  ;;  %v3049_v7 = vld [vmem:[%s3019_s5 + $0x49] sm:$0xff]  ;;  %v3059_v9 = vld [vmem:[%s3019_s5 + $0x61] sm:$0xff] }
  0x1f   : > { %v3046_v6 = vld [vmem:[%s3019_s5 + $0x51] sm:$0xff]  ;;  %v3056_v8 = vld [vmem:[%s3019_s5 + $0x69] sm:$0xff]  ;;  %v3066_v10 = vld [vmem:[%s3019_s5 + $0x81] sm:$0xff] }
  0x20   : > { %v3069_v11 = vld [vmem:[%s3019_s5 + $0x79] sm:$0xff]  ;;  %v3079_v13 = vld [vmem:[%s3019_s5 + $0x91] sm:$0xff]  ;;  %v3089_v15 = vld [vmem:[%s3019_s5 + $0xa9] sm:$0xff] }
  0x21   : > { %537 = vrot.lane.b32.xlu1 %v3029_v2, %s2929_s6  ;;  %533 = vrot.lane.b32.xlu0 %v242_v3, %s2929_s6  ;;  %v3076_v12 = vld [vmem:[%s3019_s5 + $0x99] sm:$0xff]  ;;  %v3086_v14 = vld [vmem:[%s3019_s5 + $0xb1] sm:$0xff] }
  0x22   : > { %v258_v16 = vld [vmem:[%s3019_s5 + $0xc9] sm:$0xff]  ;;  %v3097_v17 = vld [vmem:[%s3019_s5 + $0xc1] sm:$0xff]  ;;  %v259_v19 = vld [vmem:[%s3019_s5 + $0xd9] sm:$0xff] }
  0x23   : > { %v260_v18 = vld [vmem:[%s3019_s5 + $0xe1] sm:$0xff]  ;;  %v262_v20 = vld [vmem:[%s3019_s5 + $0xf9] sm:$0xff]  ;;  %v261_v21 = vld [vmem:[%s3019_s5 + $0xf1] sm:$0xff] }
  0x24   : > { %v264_v22 = vld [vmem:[%s3019_s5 + $0x111] sm:$0xff]  ;;  %v263_v23 = vld [vmem:[%s3019_s5 + $0x109] sm:$0xff]  ;;  %v265_v25 = vld [vmem:[%s3019_s5 + $0x121] sm:$0xff] }
  0x25   : > { %541 = vrot.lane.b32.xlu1 %v3036_v4, %s2929_s6  ;;  %539 = vrot.lane.b32.xlu0 %v3039_v5, %s2929_s6  ;;  %v266_v24 = vld [vmem:[%s3019_s5 + $0x129] sm:$0xff]  ;;  %v268_v26 = vld [vmem:[%s3019_s5 + $0x141] sm:$0xff] }
  0x26   : > { %v267_v27 = vld [vmem:[%s3019_s5 + $0x139] sm:$0xff]  ;;  %v269_v29 = vld [vmem:[%s3019_s5 + $0x151] sm:$0xff]  ;;  %v271_v31 = vld [vmem:[%s3019_s5 + $0x169] sm:$0xff] }
  0x27   : > { %v270_v28 = vld [vmem:[%s3019_s5 + $0x159] sm:$0xff]  ;;  %v272_v30 = vld [vmem:[%s3019_s5 + $0x171] sm:$0xff]  ;;  %v273_v33 = vld [vmem:[%s3019_s5 + $0x2] sm:$0xff] }
  0x28   : > { %v274_v32 = vld [vmem:[%s3019_s5 + $0xa] sm:$0xff]  ;;  %v3135_v34 = vld [vmem:[%s3019_s5 + $0x22] sm:$0xff]  ;;  %v3138_v35 = vld [vmem:[%s3019_s5 + $0x1a] sm:$0xff] }
  0x29   : > { %545 = vrot.lane.b32.xlu1 %v3046_v6, %s2929_s6  ;;  %543 = vrot.lane.b32.xlu0 %v3049_v7, %s2929_s6  ;;  %v3145_v36 = vld [vmem:[%s3019_s5 + $0x3a] sm:$0xff]  ;;  %v3148_v37 = vld [vmem:[%s3019_s5 + $0x32] sm:$0xff] }
  0x2a   : > { %v3155_v38 = vld [vmem:[%s3019_s5 + $0x52] sm:$0xff]  ;;  %v3158_v39 = vld [vmem:[%s3019_s5 + $0x4a] sm:$0xff]  ;;  %v3168_v41 = vld [vmem:[%s3019_s5 + $0x62] sm:$0xff] }
  0x2b   : > { %v3165_v40 = vld [vmem:[%s3019_s5 + $0x6a] sm:$0xff]  ;;  %v3175_v42 = vld [vmem:[%s3019_s5 + $0x82] sm:$0xff]  ;;  %v3178_v43 = vld [vmem:[%s3019_s5 + $0x7a] sm:$0xff] }
  0x2c   : > { %v3185_v44 = vld [vmem:[%s3019_s5 + $0x9a] sm:$0xff]  ;;  %v3188_v45 = vld [vmem:[%s3019_s5 + $0x92] sm:$0xff]  ;;  %v3198_v47 = vld [vmem:[%s3019_s5 + $0xaa] sm:$0xff] }
  0x2d   : > { %549 = vrot.lane.b32.xlu1 %v3056_v8, %s2929_s6  ;;  %547 = vrot.lane.b32.xlu0 %v3059_v9, %s2929_s6  ;;  %v3195_v46 = vld [vmem:[%s3019_s5 + $0xb2] sm:$0xff]  ;;  %v3205_v48 = vld [vmem:[%s3019_s5 + $0xca] sm:$0xff] }
  0x2e   : > { %v3208_v49 = vld [vmem:[%s3019_s5 + $0xc2] sm:$0xff]  ;;  %v3218_v51 = vld [vmem:[%s3019_s5 + $0xda] sm:$0xff]  ;;  %v293_v53 = vld [vmem:[%s3019_s5 + $0xf2] sm:$0xff] }
  0x2f   : > { %v3215_v50 = vld [vmem:[%s3019_s5 + $0xe2] sm:$0xff]  ;;  %v294_v52 = vld [vmem:[%s3019_s5 + $0xfa] sm:$0xff]  ;;  %v296_v54 = vld [vmem:[%s3019_s5 + $0x112] sm:$0xff] }
  0x30   : > { %v295_v55 = vld [vmem:[%s3019_s5 + $0x10a] sm:$0xff]  ;;  %v297_v57 = vld [vmem:[%s3019_s5 + $0x122] sm:$0xff]  ;;  %v299_v59 = vld [vmem:[%s3019_s5 + $0x13a] sm:$0xff] }
  0x31   : > { %553 = vrot.lane.b32.xlu1 %v3066_v10, %s2929_s6  ;;  %551 = vrot.lane.b32.xlu0 %v3069_v11, %s2929_s6  ;;  %v298_v56 = vld [vmem:[%s3019_s5 + $0x12a] sm:$0xff]  ;;  %v300_v58 = vld [vmem:[%s3019_s5 + $0x142] sm:$0xff] }
  0x32   : > { %v302_v62 = vld [vmem:[%s3019_s5 + $0x15a] sm:$0xff]  ;;  %v301_v63 = vld [vmem:[%s3019_s5 + $0x152] sm:$0xff] }
  0x35   : > { %557 = vrot.lane.b32.xlu1 %v3076_v12, %s2929_s6  ;;  %555 = vrot.lane.b32.xlu0 %v3079_v13, %s2929_s6 }
  0x39   : > { %561 = vrot.lane.b32.xlu1 %v3086_v14, %s2929_s6  ;;  %559 = vrot.lane.b32.xlu0 %v3089_v15, %s2929_s6 }
  0x3d   : > { %565 = vrot.lane.b32.xlu1 %v258_v16, %s2929_s6  ;;  %563 = vrot.lane.b32.xlu0 %v3097_v17, %s2929_s6  ;;  %v304_v16 = vld [vmem:[%s3019_s5 + $0x172] sm:$0xff] }
  0x41   : > { %569 = vrot.lane.b32.xlu1 %v260_v18, %s2929_s6  ;;  %567 = vrot.lane.b32.xlu0 %v259_v19, %s2929_s6  ;;  %v303_v18 = vld [vmem:[%s3019_s5 + $0x16a] sm:$0xff] }
  0x45   : > { %573 = vrot.lane.b32.xlu1 %v262_v20, %s2929_s6  ;;  %571 = vrot.lane.b32.xlu0 %v261_v21, %s2929_s6  ;;  %v3261_v21 = vld [vmem:[%s3019_s5 + $0x50] sm:$0xff] }
  0x49   : > { %577 = vrot.lane.b32.xlu1 %v264_v22, %s2929_s6  ;;  %575 = vrot.lane.b32.xlu0 %v263_v23, %s2929_s6 }
  0x4d   : > { %581 = vrot.lane.b32.xlu1 %v266_v24, %s2929_s6  ;;  %579 = vrot.lane.b32.xlu0 %v265_v25, %s2929_s6  ;;  %v3266_v24 = vld [vmem:[%s3019_s5 + $0x18] sm:$0xff]  ;;  %v3269_v25 = vld [vmem:[%s3019_s5 + $0x20] sm:$0xff] }
  0x51   : > { %585 = vrot.lane.b32.xlu1 %v268_v26, %s2929_s6  ;;  %583 = vrot.lane.b32.xlu0 %v267_v27, %s2929_s6 }
  0x55   : > { %589 = vrot.lane.b32.xlu1 %v270_v28, %s2929_s6  ;;  %587 = vrot.lane.b32.xlu0 %v269_v29, %s2929_s6  ;;  %v3284_v29 = vld [vmem:[%s3019_s5 + $0x38] sm:$0xff] }
  0x59   : > { %593 = vrot.lane.b32.xlu1 %v272_v30, %s2929_s6  ;;  %591 = vrot.lane.b32.xlu0 %v271_v31, %s2929_s6  ;;  %v3287_v30 = vld [vmem:[%s3019_s5 + $0x30] sm:$0xff] }
  0x5d   : > { %661 = vrot.lane.b32.xlu1 %v274_v32, %s2930_s7  ;;  %659 = vrot.lane.b32.xlu0 %v273_v33, %s2930_s7  ;;  %v3298_v33 = vld [vmem:[%s3019_s5 + $0x48] sm:$0xff] }
  0x61   : > { %665 = vrot.lane.b32.xlu1 %v3135_v34, %s2930_s7  ;;  %663 = vrot.lane.b32.xlu0 %v3138_v35, %s2930_s7 }
  0x65   : > { %669 = vrot.lane.b32.xlu1 %v3145_v36, %s2930_s7  ;;  %667 = vrot.lane.b32.xlu0 %v3148_v37, %s2930_s7 }
  0x69   : > { %673 = vrot.lane.b32.xlu1 %v3155_v38, %s2930_s7  ;;  %671 = vrot.lane.b32.xlu0 %v3158_v39, %s2930_s7 }
  0x6d   : > { %677 = vrot.lane.b32.xlu1 %v3165_v40, %s2930_s7  ;;  %675 = vrot.lane.b32.xlu0 %v3168_v41, %s2930_s7 }
  0x71   : > { %681 = vrot.lane.b32.xlu1 %v3175_v42, %s2930_s7  ;;  %679 = vrot.lane.b32.xlu0 %v3178_v43, %s2930_s7 }
  0x75   : > { %685 = vrot.lane.b32.xlu1 %v3185_v44, %s2930_s7  ;;  %683 = vrot.lane.b32.xlu0 %v3188_v45, %s2930_s7 }
  0x79   : > { %689 = vrot.lane.b32.xlu1 %v3195_v46, %s2930_s7  ;;  %687 = vrot.lane.b32.xlu0 %v3198_v47, %s2930_s7 }
  0x7d   : > { %693 = vrot.lane.b32.xlu1 %v3205_v48, %s2930_s7  ;;  %691 = vrot.lane.b32.xlu0 %v3208_v49, %s2930_s7 }
  0x81   : > { %697 = vrot.lane.b32.xlu1 %v3215_v50, %s2930_s7  ;;  %695 = vrot.lane.b32.xlu0 %v3218_v51, %s2930_s7 }
  0x85   : > { %701 = vrot.lane.b32.xlu1 %v294_v52, %s2930_s7  ;;  %699 = vrot.lane.b32.xlu0 %v293_v53, %s2930_s7 }
  0x89   : > { %705 = vrot.lane.b32.xlu1 %v296_v54, %s2930_s7  ;;  %703 = vrot.lane.b32.xlu0 %v295_v55, %s2930_s7  ;;  %v3309_v54 = vld [vmem:[%s3019_s5 + $0x68] sm:$0xff]  ;;  %v3312_v55 = vld [vmem:[%s3019_s5 + $0x60] sm:$0xff] }
  0x8d   : > { %709 = vrot.lane.b32.xlu1 %v298_v56, %s2930_s7  ;;  %707 = vrot.lane.b32.xlu0 %v297_v57, %s2930_s7 }
  0x8f   : > { %v3238_v60 = vpop.permute.xlu1 %535  ;;  %v3240_v61 = vpop.permute.xlu0 %531 }
  0x91   : > { %713 = vrot.lane.b32.xlu1 %v300_v58, %s2930_s7  ;;  %711 = vrot.lane.b32.xlu0 %v299_v59, %s2930_s7  ;;  %v3323_v58 = vld [vmem:[%s3019_s5 + $0x80] sm:$0xff]  ;;  %v3326_v59 = vld [vmem:[%s3019_s5 + $0x78] sm:$0xff] }
  0x92   : > { %4507 = vst [vmem:[#allocation9_spill] sm:$0xff] %v3323_v58 }
  0x93   : > { %v3246_v1 = vpop.permute.xlu1 %537  ;;  %v3248_v3 = vpop.permute.xlu0 %533 }
  0x95   : > { %717 = vrot.lane.b32.xlu1 %v302_v62, %s2930_s7  ;;  %715 = vrot.lane.b32.xlu0 %v301_v63, %s2930_s7 }
  0x97   : > { %v3254_v19 = vpop.permute.xlu1 %541  ;;  %v3256_v20 = vpop.permute.xlu0 %539 }
  0x99   : > { %721 = vrot.lane.b32.xlu1 %v304_v16, %s2930_s7  ;;  %719 = vrot.lane.b32.xlu0 %v303_v18, %s2930_s7  ;;  %v3337_v16 = vld [vmem:[%s3019_s5 + $0x90] sm:$0xff]  ;;  %v1787_v18 = vld [vmem:[%s4492_s1] sm:$0xff]  ;;  %s2935_s7 = smov 28  }
  0x9a   : > { %4510 = vst [vmem:[#allocation12_spill] sm:$0xff] %v3337_v16 }
  0x9b   : > { %v546_v22 = vpop.permute.xlu1 %545  ;;  %v3263_v23 = vpop.permute.xlu0 %543 }
  0x9c   : > { %v3273_v26 = vsel %vm1523_vm0, %v3261_v21, %v546_v22  ;;  %v1788_v22 = vld [vmem:[%s4492_s1 + $0x8] sm:$0xff] }
  0x9d   : > { %789 = vrot.lane.b32.xlu1 %v3269_v25, %s2931_s8  ;;  %787 = vrot.lane.b32.xlu0 %v3266_v24, %s2931_s8 }
  0x9f   : > { %v3279_v27 = vpop.permute.xlu1 %549  ;;  %v3281_v28 = vpop.permute.xlu0 %547 }
  0xa1   : > { %793 = vrot.lane.b32.xlu1 %v3284_v29, %s2931_s8  ;;  %791 = vrot.lane.b32.xlu0 %v3287_v30, %s2931_s8 }
  0xa3   : > { %v3293_v31 = vpop.permute.xlu1 %553  ;;  %v3295_v32 = vpop.permute.xlu0 %551 }
  0xa5   : > { %797 = vrot.lane.b32.xlu1 %v3261_v21, %s2931_s8  ;;  %795 = vrot.lane.b32.xlu0 %v3298_v33, %s2931_s8 }
  0xa7   : > { %v3304_v52 = vpop.permute.xlu1 %557  ;;  %v3306_v53 = vpop.permute.xlu0 %555 }
  0xa8   : > { %4503 = vst [vmem:[#allocation5_spill] sm:$0xff] %v3304_v52  ;;  %4504 = vst [vmem:[#allocation6_spill] sm:$0xff] %v3306_v53  ;;  %v1790_v52 = vld [vmem:[%s4492_s1 + $0x18] sm:$0xff] }
  0xa9   : > { %801 = vrot.lane.b32.xlu1 %v3309_v54, %s2931_s8  ;;  %799 = vrot.lane.b32.xlu0 %v3312_v55, %s2931_s8 }
  0xab   : > { %v3318_v56 = vpop.permute.xlu1 %561  ;;  %v3320_v57 = vpop.permute.xlu0 %559 }
  0xac   : > { %4505 = vst [vmem:[#allocation7_spill] sm:$0xff] %v3318_v56  ;;  %4506 = vst [vmem:[#allocation8_spill] sm:$0xff] %v3320_v57  ;;  %v1789_v57 = vld [vmem:[%s4492_s1 + $0x10] sm:$0xff] }
  0xad   : > { %805 = vrot.lane.b32.xlu1 %v3323_v58, %s2931_s8  ;;  %803 = vrot.lane.b32.xlu0 %v3326_v59, %s2931_s8 }
  0xaf   : > { %v3332_v62 = vpop.permute.xlu1 %565  ;;  %v3334_v63 = vpop.permute.xlu0 %563 }
  0xb0   : > { %4508 = vst [vmem:[#allocation10_spill] sm:$0xff] %v3332_v62  ;;  %4509 = vst [vmem:[#allocation11_spill] sm:$0xff] %v3334_v63  ;;  %v2803_v62 = vpack.c.bf16 %v1788_v22, %v1787_v18 }
  0xb1   : > { %915 = vrot.lane.b32.xlu1 %v3022_v0, %s2932_s13  ;;  %807 = vrot.lane.b32.xlu0 %v3337_v16, %s2931_s8  ;;  %v2807_v0 = vpack.c.bf16 %v1790_v52, %v1789_v57 }
  0xb2   : > { %2804 = vmatprep.subr.bf16.mxu0 %v2803_v62  ;;  %2811 = vmatprep.subr.bf16.mxu1 %v2803_v62 }
  0xb3   : > { %v3349_v56 = vpop.permute.xlu1 %569  ;;  %v3351_v63 = vpop.permute.xlu0 %567  ;;  %2806 = vmatpush3.bf16.msra.mxu0 %v2803_v62  ;;  %2814 = vmatpush3.bf16.msra.mxu1 %v2803_v62 }
  0xb4   : > { %4511 = vst [vmem:[#allocation13_spill] sm:$0xff] %v3349_v56  ;;  %4512 = vst [vmem:[#allocation14_spill] sm:$0xff] %v3351_v63  ;;  %2808 = vmatprep.subr.bf16.mxu0 %v2807_v0  ;;  %2812 = vmatprep.subr.bf16.mxu1 %v2807_v0 }
  0xb5   : > { %1043 = vrot.lane.b32.xlu1 %v3138_v35, %s2933_s28  ;;  %917 = vrot.lane.b32.xlu0 %v3029_v2, %s2932_s13  ;;  %v1791_v2 = vld [vmem:[%s4492_s1 + $0x20] sm:$0xf] }
  0xb7   : > { %v3363_v18 = vpop.permute.xlu1 %573  ;;  %v3365_v22 = vpop.permute.xlu0 %571  ;;  %2810 = vmatpush3.bf16.msra.mxu0 %v2807_v0  ;;  %2815 = vmatpush3.bf16.msra.mxu1 %v2807_v0 }
  0xb8   : > { %4513 = vst [vmem:[#allocation15_spill] sm:$0xff] %v3363_v18  ;;  %4514 = vst [vmem:[#allocation16_spill] sm:$0xff] %v3365_v22  ;;  %2753 = vmatprep.subr.msk.mxu0 %vm1896_vm1, %v1791_v2  ;;  %2813 = vmatprep.subr.msk.mxu1 %vm1896_vm1, %v1791_v2 }
  0xb9   : > { %1171 = vrot.lane.b32.xlu1 %v3287_v30, %s2934_s29  ;;  %1045 = vrot.lane.b32.xlu0 %v3135_v34, %s2933_s28 }
  0xbb   : > { %v3374_v35 = vpop.permute.xlu1 %577  ;;  %v3376_v52 = vpop.permute.xlu0 %575  ;;  %2754 = vmatpush3.msk.msra.mxu0 %vm1896_vm1, %v1791_v2  ;;  %2816 = vmatpush3.msk.msra.mxu1 %vm1896_vm1, %v1791_v2 }
  0xbc   : > { %4515 = vst [vmem:[#allocation17_spill] sm:$0xff] %v3374_v35  ;;  %4516 = vst [vmem:[#allocation18_spill] sm:$0xff] %v3376_v52 }
  0xbd   : > { %1299 = vrot.lane.b32.xlu1 %v3039_v5, %s2935_s7  ;;  %1173 = vrot.lane.b32.xlu0 %v3284_v29, %s2934_s29 }
  0xbf   : > { %v3382_v34 = vpop.permute.xlu1 %581  ;;  %v3384_v57 = vpop.permute.xlu0 %579 }
  0xc0   : > { %4517 = vst [vmem:[#allocation19_spill] sm:$0xff] %v3382_v34  ;;  %4518 = vst [vmem:[#allocation20_spill] sm:$0xff] %v3384_v57 }
  0xc1   : > { %1301 = vrot.lane.b32.xlu1 %v3036_v4, %s2935_s7  ;;  %919 = vrot.lane.b32.xlu0 %v3039_v5, %s2932_s13 }
  0xc3   : > { %v3390_v62 = vpop.permute.xlu1 %585  ;;  %v3392_v0 = vpop.permute.xlu0 %583 }
  0xc4   : > { %4519 = vst [vmem:[#allocation21_spill] sm:$0xff] %v3390_v62  ;;  %4520 = vst [vmem:[#allocation22_spill] sm:$0xff] %v3392_v0 }
  0xc5   : > { %921 = vrot.lane.b32.xlu1 %v3036_v4, %s2932_s13  ;;  %1427 = vrot.lane.b32.xlu0 %v3148_v37, %s2936_s9 }
  0xc7   : > { %v3398_v2 = vpop.permute.xlu1 %589  ;;  %v3400_v34 = vpop.permute.xlu0 %587 }
  0xc8   : > { %4521 = vst [vmem:[#allocation23_spill] sm:$0xff] %v3398_v2  ;;  %4522 = vst [vmem:[#allocation24_spill] sm:$0xff] %v3400_v34 }
  0xc9   : > { %1429 = vrot.lane.b32.xlu1 %v3145_v36, %s2936_s9  ;;  %1047 = vrot.lane.b32.xlu0 %v3148_v37, %s2933_s28 }
  0xcb   : > { %v3406_v5 = vpop.permute.xlu1 %593  ;;  %v3408_v62 = vpop.permute.xlu0 %591 }
  0xcc   : > { %4523 = vst [vmem:[#allocation25_spill] sm:$0xff] %v3406_v5  ;;  %4524 = vst [vmem:[#allocation26_spill] sm:$0xff] %v3408_v62 }
  0xcd   : > { %1175 = vrot.lane.b32.xlu1 %v3298_v33, %s2934_s29  ;;  %1049 = vrot.lane.b32.xlu0 %v3145_v36, %s2933_s28 }
  0xcf   : > { %v3414_v4 = vpop.permute.xlu1 %661  ;;  %v3416_v2 = vpop.permute.xlu0 %659 }
  0xd1   : > { %1303 = vrot.lane.b32.xlu1 %v3049_v7, %s2935_s7  ;;  %1177 = vrot.lane.b32.xlu0 %v3261_v21, %s2934_s29 }
  0xd3   : > { %v3422_v37 = vpop.permute.xlu1 %665  ;;  %v3424_v5 = vpop.permute.xlu0 %663 }
  0xd5   : > { %1305 = vrot.lane.b32.xlu1 %v3046_v6, %s2935_s7  ;;  %923 = vrot.lane.b32.xlu0 %v3049_v7, %s2932_s13 }
  0xd7   : > { %v3430_v36 = vpop.permute.xlu1 %669  ;;  %v3432_v62 = vpop.permute.xlu0 %667 }
  0xd9   : > { %925 = vrot.lane.b32.xlu1 %v3046_v6, %s2932_s13  ;;  %1431 = vrot.lane.b32.xlu0 %v3158_v39, %s2936_s9 }
  0xdb   : > { %v3438_v21 = vpop.permute.xlu1 %673  ;;  %v3440_v34 = vpop.permute.xlu0 %671 }
  0xdd   : > { %1433 = vrot.lane.b32.xlu1 %v3155_v38, %s2936_s9  ;;  %1051 = vrot.lane.b32.xlu0 %v3158_v39, %s2933_s28 }
  0xdf   : > { %v3446_v7 = vpop.permute.xlu1 %677  ;;  %v3448_v0 = vpop.permute.xlu0 %675 }
  0xe1   : > { %1179 = vrot.lane.b32.xlu1 %v3312_v55, %s2934_s29  ;;  %1053 = vrot.lane.b32.xlu0 %v3155_v38, %s2933_s28 }
  0xe3   : > { %v3454_v6 = vpop.permute.xlu1 %681  ;;  %v3456_v57 = vpop.permute.xlu0 %679 }
  0xe4   : > { %4525 = vst [vmem:[#allocation27_spill] sm:$0xff] %v3454_v6 }
  0xe5   : > { %1307 = vrot.lane.b32.xlu1 %v3059_v9, %s2935_s7  ;;  %1181 = vrot.lane.b32.xlu0 %v3309_v54, %s2934_s29 }
  0xe7   : > { %v3462_v39 = vpop.permute.xlu1 %685  ;;  %v3464_v35 = vpop.permute.xlu0 %683 }
  0xe8   : > { %4526 = vst [vmem:[#allocation28_spill] sm:$0xff] %v3462_v39  ;;  %4527 = vst [vmem:[#allocation29_spill] sm:$0xff] %v3464_v35  ;;  %v209_v39 = vld [vmem:[%s3019_s5] sm:$0xff] }
  0xe9   : > { %1309 = vrot.lane.b32.xlu1 %v3056_v8, %s2935_s7  ;;  %927 = vrot.lane.b32.xlu0 %v3059_v9, %s2932_s13 }
  0xeb   : > { %v3470_v38 = vpop.permute.xlu1 %689  ;;  %v3472_v52 = vpop.permute.xlu0 %687 }
  0xec   : > { %4528 = vst [vmem:[#allocation30_spill] sm:$0xff] %v3470_v38  ;;  %4529 = vst [vmem:[#allocation31_spill] sm:$0xff] %v3472_v52 }
  0xed   : > { %929 = vrot.lane.b32.xlu1 %v3056_v8, %s2932_s13  ;;  %1435 = vrot.lane.b32.xlu0 %v3168_v41, %s2936_s9 }
  0xef   : > { %v3478_v18 = vpop.permute.xlu1 %693  ;;  %v3480_v22 = vpop.permute.xlu0 %691 }
  0xf0   : > { %4530 = vst [vmem:[#allocation32_spill] sm:$0xff] %v3478_v18  ;;  %4531 = vst [vmem:[#allocation33_spill] sm:$0xff] %v3480_v22  ;;  %v3578_v18 = vld [vmem:[%s3019_s5 + $0xa8] sm:$0xff]  ;;  %v3587_v22 = vld [vmem:[%s3019_s5 + $0xb0] sm:$0xff] }
  0xf1   : > { %1437 = vrot.lane.b32.xlu1 %v3165_v40, %s2936_s9  ;;  %1055 = vrot.lane.b32.xlu0 %v3168_v41, %s2933_s28  ;;  %4547 = vst [vmem:[#allocation49_spill] sm:$0xff] %v3578_v18  ;;  %4548 = vst [vmem:[#allocation50_spill] sm:$0xff] %v3587_v22 }
  0xf3   : > { %v3486_v9 = vpop.permute.xlu1 %697  ;;  %v3488_v56 = vpop.permute.xlu0 %695 }
  0xf4   : > { %4532 = vst [vmem:[#allocation34_spill] sm:$0xff] %v3486_v9  ;;  %4533 = vst [vmem:[#allocation35_spill] sm:$0xff] %v3488_v56 }
  0xf5   : > { %1183 = vrot.lane.b32.xlu1 %v3326_v59, %s2934_s29  ;;  %1057 = vrot.lane.b32.xlu0 %v3165_v40, %s2933_s28 }
  0xf7   : > { %v3494_v8 = vpop.permute.xlu1 %701  ;;  %v3496_v63 = vpop.permute.xlu0 %699 }
  0xf8   : > { %4534 = vst [vmem:[#allocation36_spill] sm:$0xff] %v3494_v8  ;;  %4535 = vst [vmem:[#allocation37_spill] sm:$0xff] %v3496_v63 }
  0xf9   : > { %1311 = vrot.lane.b32.xlu1 %v3069_v11, %s2935_s7  ;;  %1185 = vrot.lane.b32.xlu0 %v3323_v58, %s2934_s29 }
  0xfb   : > { %v3502_v41 = vpop.permute.xlu1 %705  ;;  %v3504_v9 = vpop.permute.xlu0 %703 }
  0xfc   : > { %4536 = vst [vmem:[#allocation38_spill] sm:$0xff] %v3502_v41  ;;  %4537 = vst [vmem:[#allocation39_spill] sm:$0xff] %v3504_v9 }
  0xfd   : > { %1313 = vrot.lane.b32.xlu1 %v3066_v10, %s2935_s7  ;;  %931 = vrot.lane.b32.xlu0 %v3069_v11, %s2932_s13 }
  0xff   : > { %v3510_v40 = vpop.permute.xlu1 %709  ;;  %v3512_v8 = vpop.permute.xlu0 %707 }
 0x100   : > { %4538 = vst [vmem:[#allocation40_spill] sm:$0xff] %v3510_v40  ;;  %4539 = vst [vmem:[#allocation41_spill] sm:$0xff] %v3512_v8 }
 0x101   : > { %933 = vrot.lane.b32.xlu1 %v3066_v10, %s2932_s13  ;;  %1439 = vrot.lane.b32.xlu0 %v3178_v43, %s2936_s9 }
 0x103   : > { %v3518_v41 = vpop.permute.xlu1 %713  ;;  %v3520_v9 = vpop.permute.xlu0 %711 }
 0x104   : > { %4540 = vst [vmem:[#allocation42_spill] sm:$0xff] %v3518_v41  ;;  %4541 = vst [vmem:[#allocation43_spill] sm:$0xff] %v3520_v9  ;;  %v3539_v9 = vld [vmem:[%s3019_s5 + $0x98] sm:$0xff] }
 0x105   : > { %1441 = vrot.lane.b32.xlu1 %v3175_v42, %s2936_s9  ;;  %1059 = vrot.lane.b32.xlu0 %v3178_v43, %s2933_s28  ;;  %4546 = vst [vmem:[#allocation48_spill] sm:$0xff] %v3539_v9 }
 0x107   : > { %v3526_v11 = vpop.permute.xlu1 %717  ;;  %v3528_v40 = vpop.permute.xlu0 %715 }
 0x108   : > { %4542 = vst [vmem:[#allocation44_spill] sm:$0xff] %v3526_v11  ;;  %4543 = vst [vmem:[#allocation45_spill] sm:$0xff] %v3528_v40 }
 0x109   : > { %1187 = vrot.lane.b32.xlu1 %v3337_v16, %s2934_s29  ;;  %1061 = vrot.lane.b32.xlu0 %v3175_v42, %s2933_s28  ;;  %v1524_v16 = vsel %vm1523_vm0, %v209_v39, %v3240_v61 }
 0x10b   : > { %v3534_v10 = vpop.permute.xlu1 %721  ;;  %v3536_v41 = vpop.permute.xlu0 %719 }
 0x10c   : > { %4544 = vst [vmem:[#allocation46_spill] sm:$0xff] %v3534_v10  ;;  %4545 = vst [vmem:[#allocation47_spill] sm:$0xff] %v3536_v41 }
 0x10d   : > { %1315 = vrot.lane.b32.xlu1 %v3079_v13, %s2935_s7  ;;  %1189 = vrot.lane.b32.xlu0 %v3539_v9, %s2934_s29 }
 0x10f   : > { %v790_v43 = vpop.permute.xlu1 %789  ;;  %v788_v11 = vpop.permute.xlu0 %787 }
 0x111   : > { %935 = vrot.lane.b32.xlu1 %v3079_v13, %s2932_s13  ;;  %809 = vrot.lane.b32.xlu0 %v3539_v9, %s2931_s8 }
 0x113   : > { %v3549_v42 = vpop.permute.xlu1 %793  ;;  %v3551_v41 = vpop.permute.xlu0 %791 }
 0x115   : > { %1443 = vrot.lane.b32.xlu1 %v3188_v45, %s2936_s9  ;;  %1317 = vrot.lane.b32.xlu0 %v3076_v12, %s2935_s7 }
 0x117   : > { %v3557_v10 = vpop.permute.xlu1 %797  ;;  %v3559_v40 = vpop.permute.xlu0 %795 }
 0x119   : > { %1063 = vrot.lane.b32.xlu1 %v3188_v45, %s2933_s28  ;;  %937 = vrot.lane.b32.xlu0 %v3076_v12, %s2932_s13 }
 0x11b   : > { %v3565_v13 = vpop.permute.xlu1 %801  ;;  %v3567_v8 = vpop.permute.xlu0 %799 }
 0x11d   : > { %1065 = vrot.lane.b32.xlu1 %v3185_v44, %s2933_s28  ;;  %1445 = vrot.lane.b32.xlu0 %v3185_v44, %s2936_s9 }
 0x11f   : > { %v3573_v63 = vpop.permute.xlu1 %805  ;;  %v3575_v56 = vpop.permute.xlu0 %803 }
 0x121   : > { %811 = vrot.lane.b32.xlu1 %v3578_v18, %s2931_s8  ;;  %1191 = vrot.lane.b32.xlu0 %v3578_v18, %s2934_s29 }
 0x123   : > { %v916_v12 = vpop.permute.xlu1 %915  ;;  %v3584_v45 = vpop.permute.xlu0 %807 }
 0x125   : > { %1319 = vrot.lane.b32.xlu1 %v3089_v15, %s2935_s7  ;;  %1193 = vrot.lane.b32.xlu0 %v3587_v22, %s2934_s29 }
 0x127   : > { %v1044_v44 = vpop.permute.xlu1 %1043  ;;  %v918_v38 = vpop.permute.xlu0 %917 }
 0x129   : > { %939 = vrot.lane.b32.xlu1 %v3089_v15, %s2932_s13  ;;  %813 = vrot.lane.b32.xlu0 %v3587_v22, %s2931_s8  ;;  %v210_v15 = vld [vmem:[%s3019_s5 + $0x8] sm:$0xff]  ;;  %v1557_v22 = vsel %vm1556_vm2, %v1524_v16, %v3416_v2 }
 0x12a   : > { %v1590_v53 = vsel %vm1589_vm3, %v1557_v22, %v788_v11  ;;  %v3626_v11 = vld [vmem:[%s3019_s5 + $0xc0] sm:$0xff] }
 0x12b   : > { %v1172_v52 = vpop.permute.xlu1 %1171  ;;  %v1046_v18 = vpop.permute.xlu0 %1045  ;;  %v1623_v61 = vsel %vm1622_vm4, %v1590_v53, %v916_v12 }
 0x12c   : > { %v1656_v39 = vsel %vm1655_vm5, %v1623_v61, %v1044_v44 }
 0x12d   : > { %1447 = vrot.lane.b32.xlu1 %v3198_v47, %s2936_s9  ;;  %1321 = vrot.lane.b32.xlu0 %v3086_v14, %s2935_s7  ;;  %v1689_v16 = vsel %vm1688_vm6, %v1656_v39, %v1172_v52  ;;  %v1526_v39 = vsel %vm1523_vm0, %v3266_v24, %v3238_v60 }
 0x12f   : > { %v1300_v9 = vpop.permute.xlu1 %1299  ;;  %v1174_v35 = vpop.permute.xlu0 %1173 }
 0x130   : > { %v1722_v22 = vsel %vm1721_vm7, %v1689_v16, %v1300_v9 }
 0x131   : > { %1067 = vrot.lane.b32.xlu1 %v3198_v47, %s2933_s28  ;;  %941 = vrot.lane.b32.xlu0 %v3086_v14, %s2932_s13  ;;  %v1525_v47 = vsel %vm1523_vm0, %v210_v15, %v3248_v3 }
 0x132   : > { %v1558_v14 = vsel %vm1556_vm2, %v1525_v47, %v3414_v4 }
 0x133   : > { %v1302_v6 = vpop.permute.xlu1 %1301  ;;  %v920_v58 = vpop.permute.xlu0 %919  ;;  %v1591_v53 = vsel %vm1589_vm3, %v1558_v14, %v790_v43  ;;  %v1559_v14 = vsel %vm1556_vm2, %v1526_v39, %v3424_v5 }
 0x134   : > { %v1624_v12 = vsel %vm1622_vm4, %v1591_v53, %v918_v38  ;;  %v3639_v38 = vld [vmem:[%s3019_s5 + $0xc8] sm:$0xff] }
 0x135   : > { %1069 = vrot.lane.b32.xlu1 %v3195_v46, %s2933_s28  ;;  %1449 = vrot.lane.b32.xlu0 %v3195_v46, %s2936_s9  ;;  %v1657_v44 = vsel %vm1655_vm5, %v1624_v12, %v1046_v18 }
 0x136   : > { %v1690_v52 = vsel %vm1688_vm6, %v1657_v44, %v1174_v35 }
 0x137   : > { %v922_v3 = vpop.permute.xlu1 %921  ;;  %v1428_v2 = vpop.permute.xlu0 %1427  ;;  %v1723_v4 = vsel %vm1721_vm7, %v1690_v52, %v1302_v6  ;;  %v2618_v6 = vld [vmem:[%s3019_s5 + $0xc9] sm:$0xff] }
 0x138   : > { %v1755_v46 = vsel %vm1754_vm8, %v1722_v22, %v1428_v2  ;;  %v1527_v2 = vsel %vm1523_vm0, %v3269_v25, %v3246_v1 }
 0x139   : > { %815 = vrot.lane.b32.xlu1 %v3626_v11, %s2931_s8  ;;  %1195 = vrot.lane.b32.xlu0 %v3626_v11, %s2934_s29  ;;  %v1560_v24 = vsel %vm1556_vm2, %v1527_v2, %v3422_v37 }
 0x13a   : > { %2755 = vmatprep.mubr.msk.f32.mxu0 %vm1799_vm9, %v1755_v46 }
 0x13b   : > { %v1430_v9 = vpop.permute.xlu1 %1429  ;;  %v1048_v43 = vpop.permute.xlu0 %1047 }
 0x13c   : > { %v1756_v15 = vsel %vm1754_vm8, %v1723_v4, %v1430_v9 }
 0x13d   : > { %1323 = vrot.lane.b32.xlu1 %v3097_v17, %s2935_s7  ;;  %1197 = vrot.lane.b32.xlu0 %v3639_v38, %s2934_s29 }
 0x13e   : > { %2756 = vmatmul.mubr.msk.f32.vlgmr.msra.gmra.mrb[0].mxu0 %vm1799_vm9, %v1756_v15  ;;  %v3697_v15 = vld [vmem:[%s3019_s5 + $0xe0] sm:$0xff] }
 0x13f   : > { %v1176_v18 = vpop.permute.xlu1 %1175  ;;  %v1050_v35 = vpop.permute.xlu0 %1049 }
 0x141   : > { %943 = vrot.lane.b32.xlu1 %v3097_v17, %s2932_s13  ;;  %817 = vrot.lane.b32.xlu0 %v3639_v38, %s2931_s8  ;;  %v1592_v17 = vsel %vm1589_vm3, %v1559_v14, %v3551_v41 }
 0x142   : > { %v1625_v22 = vsel %vm1622_vm4, %v1592_v17, %v920_v58  ;;  %v1593_v58 = vsel %vm1589_vm3, %v1560_v24, %v3549_v42 }
 0x143   : > { %v1304_v61 = vpop.permute.xlu1 %1303  ;;  %v1178_v47 = vpop.permute.xlu0 %1177  ;;  %v1658_v60 = vsel %vm1655_vm5, %v1625_v22, %v1048_v43  ;;  %v1626_v25 = vsel %vm1622_vm4, %v1593_v58, %v922_v3  ;;  %v3687_v3 = vld [vmem:[%s3019_s5 + $0xd8] sm:$0xff] }
 0x144   : > { %v1691_v5 = vsel %vm1688_vm6, %v1658_v60, %v1176_v18  ;;  %v1659_v46 = vsel %vm1655_vm5, %v1626_v25, %v1050_v35  ;;  %v2621_v25 = vld [vmem:[%s3019_s5 + $0xf1] sm:$0xff] }
 0x145   : > { %1451 = vrot.lane.b32.xlu1 %v3208_v49, %s2936_s9  ;;  %1325 = vrot.lane.b32.xlu0 %v2618_v6, %s2935_s7  ;;  %v1724_v41 = vsel %vm1721_vm7, %v1691_v5, %v1304_v61  ;;  %v1692_v37 = vsel %vm1688_vm6, %v1659_v46, %v1178_v47  ;;  %v2620_v47 = vld [vmem:[%s3019_s5 + $0xe1] sm:$0xff] }
 0x147   : > { %v1306_v16 = vpop.permute.xlu1 %1305  ;;  %v924_v53 = vpop.permute.xlu0 %923 }
 0x148   : > { %v1725_v42 = vsel %vm1721_vm7, %v1692_v37, %v1306_v16  ;;  %v3751_v37 = vld [vmem:[%s3019_s5 + $0xf8] sm:$0xff] }
 0x149   : > { %1071 = vrot.lane.b32.xlu1 %v3208_v49, %s2933_s28  ;;  %945 = vrot.lane.b32.xlu0 %v2618_v6, %s2932_s13  ;;  %v1528_v6 = vsel %vm1523_vm0, %v3287_v30, %v3256_v20  ;;  %v1529_v20 = vsel %vm1523_vm0, %v3284_v29, %v3254_v19 }
 0x14a   : > { %v1561_v61 = vsel %vm1556_vm2, %v1528_v6, %v3432_v62  ;;  %v1562_v62 = vsel %vm1556_vm2, %v1529_v20, %v3430_v36 }
 0x14b   : > { %v926_v12 = vpop.permute.xlu1 %925  ;;  %v1432_v1 = vpop.permute.xlu0 %1431  ;;  %v1594_v39 = vsel %vm1589_vm3, %v1561_v61, %v3559_v40  ;;  %v1595_v22 = vsel %vm1589_vm3, %v1562_v62, %v3557_v10 }
 0x14c   : > { %v1757_v49 = vsel %vm1754_vm8, %v1724_v41, %v1432_v1  ;;  %v1627_v16 = vsel %vm1622_vm4, %v1594_v39, %v924_v53  ;;  %v1628_v19 = vsel %vm1622_vm4, %v1595_v22, %v926_v12  ;;  %v3743_v1 = vld [vmem:[%s3019_s5 + $0xf0] sm:$0xff]  ;;  %v3793_v22 = vld [vmem:[%s3019_s5 + $0x108] sm:$0xff] }
 0x14d   : > { %1073 = vrot.lane.b32.xlu1 %v3205_v48, %s2933_s28  ;;  %1453 = vrot.lane.b32.xlu0 %v3205_v48, %s2936_s9  ;;  %v2619_v48 = vld [vmem:[%s3019_s5 + $0xd9] sm:$0xff] }
 0x14e   : > { %2758 = vmatprep.mubr.msk.f32.mxu0 %vm1799_vm9, %v1757_v49 }
 0x14f   : > { %v1434_v44 = vpop.permute.xlu1 %1433  ;;  %v1052_v52 = vpop.permute.xlu0 %1051 }
 0x150   : > { %v1758_v4 = vsel %vm1754_vm8, %v1725_v42, %v1434_v44  ;;  %v1660_v30 = vsel %vm1655_vm5, %v1627_v16, %v1052_v52  ;;  %v2560_v16 = vld [vmem:[%s3019_s5 + $0xfa] sm:$0xff] }
 0x151   : > { %819 = vrot.lane.b32.xlu1 %v3687_v3, %s2931_s8  ;;  %1199 = vrot.lane.b32.xlu0 %v3687_v3, %s2934_s29 }
 0x152   : > { %2759 = vmatmul.mubr.msk.f32.gmra.mrb[2].mxu0 %vm1799_vm9, %v1758_v4 }
 0x153   : > { %v1180_v9 = vpop.permute.xlu1 %1179  ;;  %v1054_v43 = vpop.permute.xlu0 %1053 }
 0x154   : > { %v1693_v40 = vsel %vm1688_vm6, %v1660_v30, %v1180_v9  ;;  %v1661_v24 = vsel %vm1655_vm5, %v1628_v19, %v1054_v43  ;;  %v2622_v43 = vld [vmem:[%s3019_s5 + $0xf9] sm:$0xff] }
 0x155   : > { %1327 = vrot.lane.b32.xlu1 %v2619_v48, %s2935_s7  ;;  %1201 = vrot.lane.b32.xlu0 %v3697_v15, %s2934_s29 }
 0x157   : > { %v1308_v18 = vpop.permute.xlu1 %1307  ;;  %v1182_v35 = vpop.permute.xlu0 %1181 }
 0x158   : > { %v1726_v53 = vsel %vm1721_vm7, %v1693_v40, %v1308_v18  ;;  %v1694_v36 = vsel %vm1688_vm6, %v1661_v24, %v1182_v35 }
 0x159   : > { %947 = vrot.lane.b32.xlu1 %v2619_v48, %s2932_s13  ;;  %821 = vrot.lane.b32.xlu0 %v3697_v15, %s2931_s8 }
 0x15b   : > { %v1310_v14 = vpop.permute.xlu1 %1309  ;;  %v928_v17 = vpop.permute.xlu0 %927 }
 0x15c   : > { %v1727_v10 = vsel %vm1721_vm7, %v1694_v36, %v1310_v14  ;;  %v3810_v36 = vld [vmem:[%s3019_s5 + $0x110] sm:$0xff] }
 0x15d   : > { %1455 = vrot.lane.b32.xlu1 %v3218_v51, %s2936_s9  ;;  %1329 = vrot.lane.b32.xlu0 %v2620_v47, %s2935_s7 }
 0x15f   : > { %v930_v2 = vpop.permute.xlu1 %929  ;;  %v1436_v60 = vpop.permute.xlu0 %1435 }
 0x160   : > { %v1759_v29 = vsel %vm1754_vm8, %v1726_v53, %v1436_v60  ;;  %v1532_v53 = vsel %vm1523_vm0, %v3312_v55, %v3281_v28  ;;  %v2623_v60 = vld [vmem:[%s3019_s5 + $0x109] sm:$0xff] }
 0x161   : > { %1075 = vrot.lane.b32.xlu1 %v3218_v51, %s2933_s28  ;;  %949 = vrot.lane.b32.xlu0 %v2620_v47, %s2932_s13 }
 0x162   : > { %2761 = vmatprep.mubr.msk.f32.mxu0 %vm1799_vm9, %v1759_v29 }
 0x163   : > { %v1438_v5 = vpop.permute.xlu1 %1437  ;;  %v1056_v58 = vpop.permute.xlu0 %1055 }
 0x164   : > { %v1760_v41 = vsel %vm1754_vm8, %v1727_v10, %v1438_v5 }
 0x165   : > { %1077 = vrot.lane.b32.xlu1 %v3215_v50, %s2933_s28  ;;  %1457 = vrot.lane.b32.xlu0 %v3215_v50, %s2936_s9  ;;  %v1530_v50 = vsel %vm1523_vm0, %v3298_v33, %v3263_v23  ;;  %v1564_v23 = vsel %vm1556_vm2, %v3273_v26, %v3438_v21 }
 0x166   : > { %2762 = vmatmul.mubr.msk.f32.gmra.mrb[4].mxu0 %vm1799_vm9, %v1760_v41  ;;  %v1563_v42 = vsel %vm1556_vm2, %v1530_v50, %v3440_v34  ;;  %v2653_v34 = vld [vmem:[%s3019_s5 + $0xf2] sm:$0xff]  ;;  %v1533_v41 = vsel %vm1523_vm0, %v3309_v54, %v3279_v27 }
 0x167   : > { %v1184_v51 = vpop.permute.xlu1 %1183  ;;  %v1058_v12 = vpop.permute.xlu0 %1057  ;;  %v1596_v44 = vsel %vm1589_vm3, %v1563_v42, %v3567_v8  ;;  %v1597_v8 = vsel %vm1589_vm3, %v1564_v23, %v3565_v13 }
 0x168   : > { %v1629_v48 = vsel %vm1622_vm4, %v1596_v44, %v928_v17  ;;  %v1630_v61 = vsel %vm1622_vm4, %v1597_v8, %v930_v2  ;;  %v1565_v2 = vsel %vm1556_vm2, %v1532_v53, %v3448_v0 }
 0x169   : > { %823 = vrot.lane.b32.xlu1 %v3743_v1, %s2931_s8  ;;  %1203 = vrot.lane.b32.xlu0 %v3743_v1, %s2934_s29  ;;  %v1662_v9 = vsel %vm1655_vm5, %v1629_v48, %v1056_v58  ;;  %v1663_v39 = vsel %vm1655_vm5, %v1630_v61, %v1058_v12  ;;  %v1598_v19 = vsel %vm1589_vm3, %v1565_v2, %v3575_v56  ;;  %v2655_v12 = vld [vmem:[%s3019_s5 + $0x10a] sm:$0xff] }
 0x16a   : > { %v1695_v33 = vsel %vm1688_vm6, %v1662_v9, %v1184_v51  ;;  %v1566_v51 = vsel %vm1556_vm2, %v1533_v41, %v3446_v7  ;;  %v4551_v41 = vld [vmem:[#allocation6_spill] sm:$0xff] }
 0x16b   : > { %v1312_v49 = vpop.permute.xlu1 %1311  ;;  %v1186_v46 = vpop.permute.xlu0 %1185 }
 0x16c   : > { %v1728_v18 = vsel %vm1721_vm7, %v1695_v33, %v1312_v49  ;;  %v1696_v26 = vsel %vm1688_vm6, %v1663_v39, %v1186_v46  ;;  %v1599_v49 = vsel %vm1589_vm3, %v1566_v51, %v3573_v63  ;;  %v2562_v63 = vld [vmem:[%s3019_s5 + $0x112] sm:$0xff]  ;;  %v4552_v51 = vld [vmem:[#allocation12_spill] sm:$0xff] }
 0x16d   : > { %1331 = vrot.lane.b32.xlu1 %v2621_v25, %s2935_s7  ;;  %1205 = vrot.lane.b32.xlu0 %v3751_v37, %s2934_s29 }
 0x16f   : > { %v1314_v52 = vpop.permute.xlu1 %1313  ;;  %v932_v4 = vpop.permute.xlu0 %931 }
 0x170   : > { %v1729_v21 = vsel %vm1721_vm7, %v1696_v26, %v1314_v52  ;;  %v1631_v28 = vsel %vm1622_vm4, %v1598_v19, %v932_v4 }
 0x171   : > { %951 = vrot.lane.b32.xlu1 %v2621_v25, %s2932_s13  ;;  %825 = vrot.lane.b32.xlu0 %v3751_v37, %s2931_s8  ;;  %v2624_v25 = vld [vmem:[%s3019_s5 + $0x111] sm:$0xff] }
 0x173   : > { %v934_v35 = vpop.permute.xlu1 %933  ;;  %v1440_v6 = vpop.permute.xlu0 %1439 }
 0x174   : > { %v1761_v47 = vsel %vm1754_vm8, %v1728_v18, %v1440_v6  ;;  %v1632_v27 = vsel %vm1622_vm4, %v1599_v49, %v934_v35  ;;  %v2625_v18 = vld [vmem:[%s3019_s5 + $0x121] sm:$0xff] }
 0x175   : > { %1459 = vrot.lane.b32.xlu1 %v2653_v34, %s2936_s9  ;;  %1333 = vrot.lane.b32.xlu0 %v2622_v43, %s2935_s7 }
 0x176   : > { %2764 = vmatprep.mubr.msk.f32.mxu0 %vm1799_vm9, %v1761_v47  ;;  %v3864_v47 = vld [vmem:[%s3019_s5 + $0x128] sm:$0xff] }
 0x177   : > { %v1442_v13 = vpop.permute.xlu1 %1441  ;;  %v1060_v14 = vpop.permute.xlu0 %1059 }
 0x178   : > { %v1762_v17 = vsel %vm1754_vm8, %v1729_v21, %v1442_v13  ;;  %v1664_v55 = vsel %vm1655_vm5, %v1631_v28, %v1060_v14  ;;  %v4549_v13 = vld [vmem:[#allocation9_spill] sm:$0xff] }
 0x179   : > { %1079 = vrot.lane.b32.xlu1 %v2653_v34, %s2933_s28  ;;  %953 = vrot.lane.b32.xlu0 %v2622_v43, %s2932_s13  ;;  %v3847_v34 = vld [vmem:[%s3019_s5 + $0x120] sm:$0xff]  ;;  %v1534_v43 = vsel %vm1523_vm0, %v3326_v59, %v3295_v32  ;;  %v1535_v14 = vsel %vm1523_vm0, %v4549_v13, %v3293_v31 }
 0x17a   : > { %2765 = vmatmul.mubr.msk.f32.gmra.mrb[6].mxu0 %vm1799_vm9, %v1762_v17  ;;  %v1567_v8 = vsel %vm1556_vm2, %v1534_v43, %v3456_v57  ;;  %v4550_v17 = vld [vmem:[#allocation27_spill] sm:$0xff] }
 0x17b   : > { %v1188_v20 = vpop.permute.xlu1 %1187  ;;  %v1062_v30 = vpop.permute.xlu0 %1061  ;;  %v1600_v35 = vsel %vm1589_vm3, %v1567_v8, %v3584_v45  ;;  %v4556_v8 = vld [vmem:[#allocation28_spill] sm:$0xff] }
 0x17c   : > { %v1697_v0 = vsel %vm1688_vm6, %v1664_v55, %v1188_v20  ;;  %v1665_v54 = vsel %vm1655_vm5, %v1632_v27, %v1062_v30  ;;  %v2657_v20 = vld [vmem:[%s3019_s5 + $0x122] sm:$0xff] }
 0x17d   : > { %1081 = vrot.lane.b32.xlu1 %v2560_v16, %s2933_s28  ;;  %1461 = vrot.lane.b32.xlu0 %v2560_v16, %s2936_s9  ;;  %v1568_v16 = vsel %vm1556_vm2, %v1535_v14, %v4550_v17  ;;  %v2626_v30 = vld [vmem:[%s3019_s5 + $0x129] sm:$0xff] }
 0x17f   : > { %v1316_v62 = vpop.permute.xlu1 %1315  ;;  %v1190_v40 = vpop.permute.xlu0 %1189 }
 0x180   : > { %v1730_v56 = vsel %vm1721_vm7, %v1697_v0, %v1316_v62  ;;  %v1698_v7 = vsel %vm1688_vm6, %v1665_v54, %v1190_v40 }
 0x181   : > { %827 = vrot.lane.b32.xlu1 %v3793_v22, %s2931_s8  ;;  %1207 = vrot.lane.b32.xlu0 %v3793_v22, %s2934_s29 }
 0x183   : > { %v936_v29 = vpop.permute.xlu1 %935  ;;  %v3807_v24 = vpop.permute.xlu0 %809 }
 0x184   : > { %v1633_v32 = vsel %vm1622_vm4, %v1600_v35, %v936_v29  ;;  %v1601_v62 = vsel %vm1589_vm3, %v1568_v16, %v3807_v24  ;;  %v2564_v24 = vld [vmem:[%s3019_s5 + $0x12a] sm:$0xff]  ;;  %v2659_v35 = vld [vmem:[%s3019_s5 + $0x13a] sm:$0xff] }
 0x185   : > { %1335 = vrot.lane.b32.xlu1 %v2623_v60, %s2935_s7  ;;  %1209 = vrot.lane.b32.xlu0 %v3810_v36, %s2934_s29 }
 0x187   : > { %v1444_v10 = vpop.permute.xlu1 %1443  ;;  %v1318_v5 = vpop.permute.xlu0 %1317 }
 0x188   : > { %v1763_v58 = vsel %vm1754_vm8, %v1730_v56, %v1444_v10  ;;  %v1731_v42 = vsel %vm1721_vm7, %v1698_v7, %v1318_v5  ;;  %v2501_v10 = vld [vmem:[%s3019_s5 + $0x138] sm:$0xff] }
 0x189   : > { %955 = vrot.lane.b32.xlu1 %v2623_v60, %s2932_s13  ;;  %829 = vrot.lane.b32.xlu0 %v3810_v36, %s2931_s8 }
 0x18a   : > { %2767 = vmatprep.mubr.msk.f32.mxu0 %vm1799_vm9, %v1763_v58 }
 0x18b   : > { %v1064_v46 = vpop.permute.xlu1 %1063  ;;  %v938_v50 = vpop.permute.xlu0 %937 }
 0x18c   : > { %v1666_v59 = vsel %vm1655_vm5, %v1633_v32, %v1064_v46  ;;  %v1634_v31 = vsel %vm1622_vm4, %v1601_v62, %v938_v50  ;;  %v2627_v46 = vld [vmem:[%s3019_s5 + $0x139] sm:$0xff] }
 0x18d   : > { %1463 = vrot.lane.b32.xlu1 %v2655_v12, %s2936_s9  ;;  %1337 = vrot.lane.b32.xlu0 %v2624_v25, %s2935_s7  ;;  %v2596_v50 = vld [vmem:[%s3019_s5 + $0x140] sm:$0xff] }
 0x18f   : > { %v1066_v44 = vpop.permute.xlu1 %1065  ;;  %v1446_v52 = vpop.permute.xlu0 %1445 }
 0x190   : > { %v1764_v4 = vsel %vm1754_vm8, %v1731_v42, %v1446_v52  ;;  %v1667_v2 = vsel %vm1655_vm5, %v1634_v31, %v1066_v44  ;;  %v4558_v31 = vld [vmem:[#allocation49_spill] sm:$0xff] }
 0x191   : > { %1083 = vrot.lane.b32.xlu1 %v2655_v12, %s2933_s28  ;;  %957 = vrot.lane.b32.xlu0 %v2624_v25, %s2932_s13  ;;  %v1536_v12 = vsel %vm1523_vm0, %v4552_v51, %v4551_v41  ;;  %v4553_v25 = vld [vmem:[#allocation29_spill] sm:$0xff] }
 0x192   : > { %2768 = vmatmul.mubr.msk.f32.gmra.mrb[8].mxu0 %vm1799_vm9, %v1764_v4  ;;  %v1569_v49 = vsel %vm1556_vm2, %v1536_v12, %v4553_v25  ;;  %v4560_v25 = vld [vmem:[#allocation7_spill] sm:$0xff] }
 0x193   : > { %v812_v48 = vpop.permute.xlu1 %811  ;;  %v1192_v9 = vpop.permute.xlu0 %1191 }
 0x194   : > { %v1699_v57 = vsel %vm1688_vm6, %v1666_v59, %v1192_v9  ;;  %v1602_v27 = vsel %vm1589_vm3, %v1569_v49, %v812_v48  ;;  %v4561_v49 = vld [vmem:[#allocation50_spill] sm:$0xff] }
 0x195   : > { %1085 = vrot.lane.b32.xlu1 %v2562_v63, %s2933_s28  ;;  %1465 = vrot.lane.b32.xlu0 %v2562_v63, %s2936_s9 }
 0x197   : > { %v1320_v23 = vpop.permute.xlu1 %1319  ;;  %v1194_v33 = vpop.permute.xlu0 %1193 }
 0x198   : > { %v1732_v45 = vsel %vm1721_vm7, %v1699_v57, %v1320_v23  ;;  %v1700_v60 = vsel %vm1688_vm6, %v1667_v2, %v1194_v33  ;;  %v4554_v23 = vld [vmem:[#allocation5_spill] sm:$0xff]  ;;  %v4555_v33 = vld [vmem:[#allocation48_spill] sm:$0xff] }
 0x199   : > { %831 = vrot.lane.b32.xlu1 %v3847_v34, %s2931_s8  ;;  %1211 = vrot.lane.b32.xlu0 %v3847_v34, %s2934_s29  ;;  %v1537_v43 = vsel %vm1523_vm0, %v4555_v33, %v4554_v23 }
 0x19b   : > { %v940_v6 = vpop.permute.xlu1 %939  ;;  %v3861_v61 = vpop.permute.xlu0 %813 }
 0x19c   : > { %v1635_v42 = vsel %vm1622_vm4, %v1602_v27, %v940_v6  ;;  %v2628_v6 = vld [vmem:[%s3019_s5 + $0x141] sm:$0xff] }
 0x19d   : > { %1339 = vrot.lane.b32.xlu1 %v2625_v18, %s2935_s7  ;;  %1213 = vrot.lane.b32.xlu0 %v3864_v47, %s2934_s29 }
 0x19f   : > { %v1448_v39 = vpop.permute.xlu1 %1447  ;;  %v1322_v26 = vpop.permute.xlu0 %1321 }
 0x1a0   : > { %v1765_v21 = vsel %vm1754_vm8, %v1732_v45, %v1448_v39  ;;  %v1733_v19 = vsel %vm1721_vm7, %v1700_v60, %v1322_v26  ;;  %v4559_v60 = vld [vmem:[#allocation31_spill] sm:$0xff] }
 0x1a1   : > { %959 = vrot.lane.b32.xlu1 %v2625_v18, %s2932_s13  ;;  %833 = vrot.lane.b32.xlu0 %v3864_v47, %s2931_s8  ;;  %v1570_v18 = vsel %vm1556_vm2, %v1537_v43, %v4556_v8 }
 0x1a2   : > { %2770 = vmatprep.mubr.msk.f32.mxu0 %vm1799_vm9, %v1765_v21  ;;  %v1603_v32 = vsel %vm1589_vm3, %v1570_v18, %v3861_v61  ;;  %v2566_v61 = vld [vmem:[%s3019_s5 + $0x142] sm:$0xff] }
 0x1a3   : > { %v1068_v40 = vpop.permute.xlu1 %1067  ;;  %v942_v53 = vpop.permute.xlu0 %941 }
 0x1a4   : > { %v1668_v44 = vsel %vm1655_vm5, %v1635_v42, %v1068_v40  ;;  %v1636_v45 = vsel %vm1622_vm4, %v1603_v32, %v942_v53  ;;  %v4557_v53 = vld [vmem:[#allocation8_spill] sm:$0xff] }
 0x1a5   : > { %1467 = vrot.lane.b32.xlu1 %v2657_v20, %s2936_s9  ;;  %1341 = vrot.lane.b32.xlu0 %v2626_v30, %s2935_s7  ;;  %v1538_v2 = vsel %vm1523_vm0, %v4558_v31, %v4557_v53  ;;  %v2630_v42 = vld [vmem:[%s3019_s5 + $0x159] sm:$0xff]  ;;  %v4565_v31 = vld [vmem:[#allocation10_spill] sm:$0xff] }
 0x1a7   : > { %v1070_v29 = vpop.permute.xlu1 %1069  ;;  %v1450_v28 = vpop.permute.xlu0 %1449 }
 0x1a8   : > { %v1766_v55 = vsel %vm1754_vm8, %v1733_v19, %v1450_v28  ;;  %v1669_v39 = vsel %vm1655_vm5, %v1636_v45, %v1070_v29  ;;  %v1571_v19 = vsel %vm1556_vm2, %v1538_v2, %v4559_v60  ;;  %v2629_v29 = vld [vmem:[%s3019_s5 + $0x151] sm:$0xff]  ;;  %v1541_v2 = vsel %vm1523_vm0, %v3639_v38, %v4565_v31  ;;  %v4566_v60 = vld [vmem:[#allocation32_spill] sm:$0xff] }
 0x1a9   : > { %1087 = vrot.lane.b32.xlu1 %v2657_v20, %s2933_s28  ;;  %961 = vrot.lane.b32.xlu0 %v2626_v30, %s2932_s13  ;;  %v2503_v30 = vld [vmem:[%s3019_s5 + $0x150] sm:$0xff]  ;;  %v2598_v28 = vld [vmem:[%s3019_s5 + $0x158] sm:$0xff] }
 0x1aa   : > { %2771 = vmatmul.mubr.msk.f32.gmra.mrb[10].mxu0 %vm1799_vm9, %v1766_v55  ;;  %v2603_v31 = vld [vmem:[%s3019_s5 + $0x198] sm:$0xff] }
 0x1ab   : > { %v816_v0 = vpop.permute.xlu1 %815  ;;  %v1196_v56 = vpop.permute.xlu0 %1195 }
 0x1ac   : > { %v1701_v52 = vsel %vm1688_vm6, %v1668_v44, %v1196_v56  ;;  %v1604_v55 = vsel %vm1589_vm3, %v1571_v19, %v816_v0  ;;  %v1574_v19 = vsel %vm1556_vm2, %v1541_v2, %v4566_v60 }
 0x1ad   : > { %1089 = vrot.lane.b32.xlu1 %v2564_v24, %s2933_s28  ;;  %1469 = vrot.lane.b32.xlu0 %v2564_v24, %s2936_s9 }
 0x1af   : > { %v1324_v5 = vpop.permute.xlu1 %1323  ;;  %v1198_v58 = vpop.permute.xlu0 %1197 }
 0x1b0   : > { %v1734_v4 = vsel %vm1721_vm7, %v1701_v52, %v1324_v5  ;;  %v1702_v26 = vsel %vm1688_vm6, %v1669_v39, %v1198_v58  ;;  %v4564_v39 = vld [vmem:[#allocation33_spill] sm:$0xff] }
 0x1b1   : > { %835 = vrot.lane.b32.xlu1 %v2501_v10, %s2931_s8  ;;  %1215 = vrot.lane.b32.xlu0 %v2501_v10, %s2934_s29 }
 0x1b3   : > { %v944_v54 = vpop.permute.xlu1 %943  ;;  %v3911_v7 = vpop.permute.xlu0 %817 }
 0x1b4   : > { %v1637_v10 = vsel %vm1622_vm4, %v1604_v55, %v944_v54  ;;  %v2661_v54 = vld [vmem:[%s3019_s5 + $0x152] sm:$0xff] }
 0x1b5   : > { %1343 = vrot.lane.b32.xlu1 %v2627_v46, %s2935_s7  ;;  %1217 = vrot.lane.b32.xlu0 %v2596_v50, %s2934_s29 }
 0x1b7   : > { %v1452_v63 = vpop.permute.xlu1 %1451  ;;  %v1326_v9 = vpop.permute.xlu0 %1325 }
 0x1b8   : > { %v1767_v48 = vsel %vm1754_vm8, %v1734_v4, %v1452_v63  ;;  %v1735_v21 = vsel %vm1721_vm7, %v1702_v26, %v1326_v9 }
 0x1b9   : > { %963 = vrot.lane.b32.xlu1 %v2627_v46, %s2932_s13  ;;  %837 = vrot.lane.b32.xlu0 %v2596_v50, %s2931_s8  ;;  %v1539_v46 = vsel %vm1523_vm0, %v4561_v49, %v4560_v25  ;;  %v4562_v50 = vld [vmem:[#allocation30_spill] sm:$0xff] }
 0x1ba   : > { %2773 = vmatprep.mubr.msk.f32.mxu0 %vm1799_vm9, %v1767_v48  ;;  %v1572_v27 = vsel %vm1556_vm2, %v1539_v46, %v4562_v50  ;;  %v2507_v46 = vld [vmem:[%s3019_s5 + $0x180] sm:$0xff] }
 0x1bb   : > { %v1072_v59 = vpop.permute.xlu1 %1071  ;;  %v946_v57 = vpop.permute.xlu0 %945  ;;  %v1605_v44 = vsel %vm1589_vm3, %v1572_v27, %v3911_v7  ;;  %v2568_v7 = vld [vmem:[%s3019_s5 + $0x15a] sm:$0xff] }
 0x1bc   : > { %v1670_v5 = vsel %vm1655_vm5, %v1637_v10, %v1072_v59  ;;  %v1638_v63 = vsel %vm1622_vm4, %v1605_v44, %v946_v57  ;;  %v4563_v57 = vld [vmem:[#allocation11_spill] sm:$0xff] }
 0x1bd   : > { %1471 = vrot.lane.b32.xlu1 %v2659_v35, %s2936_s9  ;;  %1345 = vrot.lane.b32.xlu0 %v2628_v6, %s2935_s7  ;;  %v1540_v45 = vsel %vm1523_vm0, %v3626_v11, %v4563_v57  ;;  %v4568_v44 = vld [vmem:[#allocation35_spill] sm:$0xff] }
 0x1be   : > { %v1573_v26 = vsel %vm1556_vm2, %v1540_v45, %v4564_v39  ;;  %v2665_v45 = vld [vmem:[%s3019_s5 + $0x182] sm:$0xff] }
 0x1bf   : > { %v1074_v13 = vpop.permute.xlu1 %1073  ;;  %v1454_v14 = vpop.permute.xlu0 %1453  ;;  %v2634_v39 = vld [vmem:[%s3019_s5 + $0x189] sm:$0xff] }
 0x1c0   : > { %v1768_v17 = vsel %vm1754_vm8, %v1735_v21, %v1454_v14  ;;  %v1671_v9 = vsel %vm1655_vm5, %v1638_v63, %v1074_v13  ;;  %v2631_v21 = vld [vmem:[%s3019_s5 + $0x169] sm:$0xff] }
 0x1c1   : > { %1091 = vrot.lane.b32.xlu1 %v2659_v35, %s2933_s28  ;;  %965 = vrot.lane.b32.xlu0 %v2628_v6, %s2932_s13  ;;  %v2505_v6 = vld [vmem:[%s3019_s5 + $0x168] sm:$0xff]  ;;  %v2600_v13 = vld [vmem:[%s3019_s5 + $0x170] sm:$0xff] }
 0x1c2   : > { %2774 = vmatmul.mubr.msk.f32.gmra.mrb[12].mxu0 %vm1799_vm9, %v1768_v17  ;;  %v2602_v63 = vld [vmem:[%s3019_s5 + $0x188] sm:$0xff] }
 0x1c3   : > { %v820_v16 = vpop.permute.xlu1 %819  ;;  %v1200_v20 = vpop.permute.xlu0 %1199 }
 0x1c4   : > { %v1703_v58 = vsel %vm1688_vm6, %v1670_v5, %v1200_v20  ;;  %v1606_v14 = vsel %vm1589_vm3, %v1573_v26, %v820_v16 }
 0x1c5   : > { %1093 = vrot.lane.b32.xlu1 %v2566_v61, %s2933_s28  ;;  %1473 = vrot.lane.b32.xlu0 %v2566_v61, %s2936_s9 }
 0x1c7   : > { %v1328_v62 = vpop.permute.xlu1 %1327  ;;  %v1202_v40 = vpop.permute.xlu0 %1201 }
 0x1c8   : > { %v1736_v41 = vsel %vm1721_vm7, %v1703_v58, %v1328_v62  ;;  %v1704_v48 = vsel %vm1688_vm6, %v1671_v9, %v1202_v40 }
 0x1c9   : > { %839 = vrot.lane.b32.xlu1 %v2503_v30, %s2931_s8  ;;  %1219 = vrot.lane.b32.xlu0 %v2503_v30, %s2934_s29 }
 0x1cb   : > { %v948_v24 = vpop.permute.xlu1 %947  ;;  %v3956_v56 = vpop.permute.xlu0 %821 }
 0x1cc   : > { %v1639_v20 = vsel %vm1622_vm4, %v1606_v14, %v948_v24  ;;  %v1607_v55 = vsel %vm1589_vm3, %v1574_v19, %v3956_v56  ;;  %v2570_v56 = vld [vmem:[%s3019_s5 + $0x172] sm:$0xff]  ;;  %v4093_v19 = vld [vmem:[%s4493_s2] ss:$0 sm:$0xff] }
 0x1cd   : > { %1347 = vrot.lane.b32.xlu1 %v2629_v29, %s2935_s7  ;;  %1221 = vrot.lane.b32.xlu0 %v2598_v28, %s2934_s29 }
 0x1cf   : > { %v1456_v51 = vpop.permute.xlu1 %1455  ;;  %v1330_v12 = vpop.permute.xlu0 %1329 }
 0x1d0   : > { %v1769_v0 = vsel %vm1754_vm8, %v1736_v41, %v1456_v51  ;;  %v1737_v23 = vsel %vm1721_vm7, %v1704_v48, %v1330_v12 }
 0x1d1   : > { %967 = vrot.lane.b32.xlu1 %v2629_v29, %s2932_s13  ;;  %841 = vrot.lane.b32.xlu0 %v2598_v28, %s2931_s8  ;;  %v2663_v29 = vld [vmem:[%s3019_s5 + $0x16a] sm:$0xff] }
 0x1d2   : > { %2776 = vmatprep.mubr.msk.f32.mxu0 %vm1799_vm9, %v1769_v0  ;;  %v2632_v28 = vld [vmem:[%s3019_s5 + $0x171] sm:$0xff] }
 0x1d3   : > { %v1076_v52 = vpop.permute.xlu1 %1075  ;;  %v950_v4 = vpop.permute.xlu0 %949 }
 0x1d4   : > { %v1672_v11 = vsel %vm1655_vm5, %v1639_v20, %v1076_v52  ;;  %v1640_v5 = vsel %vm1622_vm4, %v1607_v55, %v950_v4  ;;  %v2633_v4 = vld [vmem:[%s3019_s5 + $0x181] sm:$0xff] }
 0x1d5   : > { %1475 = vrot.lane.b32.xlu1 %v2661_v54, %s2936_s9  ;;  %1349 = vrot.lane.b32.xlu0 %v2630_v42, %s2935_s7 }
 0x1d7   : > { %v1078_v33 = vpop.permute.xlu1 %1077  ;;  %v1458_v43 = vpop.permute.xlu0 %1457 }
 0x1d8   : > { %v1770_v8 = vsel %vm1754_vm8, %v1737_v23, %v1458_v43  ;;  %v1673_v38 = vsel %vm1655_vm5, %v1640_v5, %v1078_v33 }
 0x1d9   : > { %1095 = vrot.lane.b32.xlu1 %v2661_v54, %s2933_s28  ;;  %969 = vrot.lane.b32.xlu0 %v2630_v42, %s2932_s13  ;;  %v4567_v54 = vld [vmem:[#allocation14_spill] sm:$0xff] }
 0x1da   : > { %2777 = vmatmul.mubr.msk.f32.gmra.mrb[14].mxu0 %vm1799_vm9, %v1770_v8  ;;  %v1542_v42 = vsel %vm1523_vm0, %v3687_v3, %v4567_v54 }
 0x1db   : > { %v824_v18 = vpop.permute.xlu1 %823  ;;  %v1204_v35 = vpop.permute.xlu0 %1203  ;;  %v1575_v52 = vsel %vm1556_vm2, %v1542_v42, %v4568_v44  ;;  %v2668_v42 = vld [vmem:[%s3019_s5 + $0x1a2] sm:$0xff]  ;;  %v2667_v44 = vld [vmem:[%s3019_s5 + $0x19a] sm:$0xff] }
 0x1dc   : > { %v1705_v30 = vsel %vm1688_vm6, %v1672_v11, %v1204_v35  ;;  %v1608_v9 = vsel %vm1589_vm3, %v1575_v52, %v824_v18 }
 0x1dd   : > { %1097 = vrot.lane.b32.xlu1 %v2568_v7, %s2933_s28  ;;  %1477 = vrot.lane.b32.xlu0 %v2568_v7, %s2936_s9 }
 0x1df   : > { %v1332_v32 = vpop.permute.xlu1 %1331  ;;  %v1206_v59 = vpop.permute.xlu0 %1205 }
 0x1e0   : > { %v1738_v62 = vsel %vm1721_vm7, %v1705_v30, %v1332_v32  ;;  %v1706_v58 = vsel %vm1688_vm6, %v1673_v38, %v1206_v59  ;;  %v4570_v59 = vld [vmem:[#allocation34_spill] sm:$0xff] }
 0x1e1   : > { %843 = vrot.lane.b32.xlu1 %v2505_v6, %s2931_s8  ;;  %1223 = vrot.lane.b32.xlu0 %v2505_v6, %s2934_s29  ;;  %v4569_v6 = vld [vmem:[#allocation13_spill] sm:$0xff] }
 0x1e2   : > { %v1543_v32 = vsel %vm1523_vm0, %v3697_v15, %v4569_v6 }
 0x1e3   : > { %v952_v17 = vpop.permute.xlu1 %951  ;;  %v4001_v61 = vpop.permute.xlu0 %825  ;;  %v1576_v57 = vsel %vm1556_vm2, %v1543_v32, %v4570_v59 }
 0x1e4   : > { %v1641_v33 = vsel %vm1622_vm4, %v1608_v9, %v952_v17  ;;  %v1609_v26 = vsel %vm1589_vm3, %v1576_v57, %v4001_v61 }
 0x1e5   : > { %1351 = vrot.lane.b32.xlu1 %v2631_v21, %s2935_s7  ;;  %1225 = vrot.lane.b32.xlu0 %v2600_v13, %s2934_s29 }
 0x1e7   : > { %v1460_v40 = vpop.permute.xlu1 %1459  ;;  %v1334_v53 = vpop.permute.xlu0 %1333 }
 0x1e8   : > { %v1771_v16 = vsel %vm1754_vm8, %v1738_v62, %v1460_v40  ;;  %v1739_v41 = vsel %vm1721_vm7, %v1706_v58, %v1334_v53  ;;  %v2572_v62 = vld [vmem:[%s3019_s5 + $0x18a] sm:$0xff]  ;;  %v2636_v58 = vld [vmem:[%s3019_s5 + $0x1a1] sm:$0xff] }
 0x1e9   : > { %971 = vrot.lane.b32.xlu1 %v2631_v21, %s2932_s13  ;;  %845 = vrot.lane.b32.xlu0 %v2600_v13, %s2931_s8 }
 0x1ea   : > { %2779 = vmatprep.mubr.msk.f32.mxu1 %vm1799_vm9, %v1771_v16  ;;  %v2604_v16 = vld [vmem:[%s3019_s5 + $0x1a0] sm:$0xff] }
 0x1eb   : > { %v1080_v24 = vpop.permute.xlu1 %1079  ;;  %v954_v10 = vpop.permute.xlu0 %953 }
 0x1ec   : > { %v1674_v3 = vsel %vm1655_vm5, %v1641_v33, %v1080_v24  ;;  %v1642_v15 = vsel %vm1622_vm4, %v1609_v26, %v954_v10  ;;  %v4572_v24 = vld [vmem:[#allocation37_spill] sm:$0xff] }
 0x1ed   : > { %1479 = vrot.lane.b32.xlu1 %v2663_v29, %s2936_s9  ;;  %1353 = vrot.lane.b32.xlu0 %v2632_v28, %s2935_s7 }
 0x1ef   : > { %v1082_v51 = vpop.permute.xlu1 %1081  ;;  %v1462_v12 = vpop.permute.xlu0 %1461 }
 0x1f0   : > { %v1772_v0 = vsel %vm1754_vm8, %v1739_v41, %v1462_v12  ;;  %v1675_v14 = vsel %vm1655_vm5, %v1642_v15, %v1082_v51  ;;  %v2635_v41 = vld [vmem:[%s3019_s5 + $0x199] sm:$0xff] }
 0x1f1   : > { %1099 = vrot.lane.b32.xlu1 %v2663_v29, %s2933_s28  ;;  %973 = vrot.lane.b32.xlu0 %v2632_v28, %s2932_s13  ;;  %v4571_v29 = vld [vmem:[#allocation16_spill] sm:$0xff] }
 0x1f2   : > { %2780 = vmatmul.mubr.msk.f32.vlgmr.msra.gmra.mrb[0].mxu1 %vm1799_vm9, %v1772_v0  ;;  %v1544_v28 = vsel %vm1523_vm0, %v3743_v1, %v4571_v29  ;;  %v4576_v29 = vld [vmem:[#allocation39_spill] sm:$0xff] }
 0x1f3   : > { %v4033_v25 = vpop.permute.xlu1 %827  ;;  %v1208_v49 = vpop.permute.xlu0 %1207  ;;  %v1577_v10 = vsel %vm1556_vm2, %v1544_v28, %v4572_v24 }
 0x1f4   : > { %v1707_v43 = vsel %vm1688_vm6, %v1674_v3, %v1208_v49  ;;  %v1610_v51 = vsel %vm1589_vm3, %v1577_v10, %v4033_v25 }
 0x1f5   : > { %1101 = vrot.lane.b32.xlu1 %v2570_v56, %s2933_s28  ;;  %1481 = vrot.lane.b32.xlu0 %v2570_v56, %s2936_s9 }
 0x1f7   : > { %v1336_v50 = vpop.permute.xlu1 %1335  ;;  %v1210_v27 = vpop.permute.xlu0 %1209 }
 0x1f8   : > { %v1740_v8 = vsel %vm1721_vm7, %v1707_v43, %v1336_v50  ;;  %v1708_v17 = vsel %vm1688_vm6, %v1675_v14, %v1210_v27 }
 0x1f9   : > { %847 = vrot.lane.b32.xlu1 %v2507_v46, %s2931_s8  ;;  %1227 = vrot.lane.b32.xlu0 %v2507_v46, %s2934_s29 }
 0x1fb   : > { %v956_v48 = vpop.permute.xlu1 %955  ;;  %v4048_v23 = vpop.permute.xlu0 %829 }
 0x1fc   : > { %v1643_v56 = vsel %vm1622_vm4, %v1610_v51, %v956_v48 }
 0x1fd   : > { %1355 = vrot.lane.b32.xlu1 %v2633_v4, %s2935_s7  ;;  %1229 = vrot.lane.b32.xlu0 %v2602_v63, %s2934_s29 }
 0x1ff   : > { %v1464_v7 = vpop.permute.xlu1 %1463  ;;  %v1338_v35 = vpop.permute.xlu0 %1337 }
 0x200   : > { %v1773_v18 = vsel %vm1754_vm8, %v1740_v8, %v1464_v7  ;;  %v1741_v20 = vsel %vm1721_vm7, %v1708_v17, %v1338_v35  ;;  %v4573_v8 = vld [vmem:[#allocation15_spill] sm:$0xff] }
 0x201   : > { %975 = vrot.lane.b32.xlu1 %v2633_v4, %s2932_s13  ;;  %849 = vrot.lane.b32.xlu0 %v2602_v63, %s2931_s8  ;;  %v1545_v7 = vsel %vm1523_vm0, %v3751_v37, %v4573_v8 }
 0x202   : > { %2782 = vmatprep.mubr.msk.f32.mxu1 %vm1799_vm9, %v1773_v18  ;;  %v4574_v18 = vld [vmem:[#allocation36_spill] sm:$0xff] }
 0x203   : > { %v1084_v21 = vpop.permute.xlu1 %1083  ;;  %v4069_v13 = vpop.permute.xlu0 %957  ;;  %v1578_v6 = vsel %vm1556_vm2, %v1545_v7, %v4574_v18 }
 0x204   : > { %v1676_v46 = vsel %vm1655_vm5, %v1643_v56, %v1084_v21  ;;  %v1611_v59 = vsel %vm1589_vm3, %v1578_v6, %v4048_v23 }
 0x205   : > { %1483 = vrot.lane.b32.xlu1 %v2665_v45, %s2936_s9  ;;  %1357 = vrot.lane.b32.xlu0 %v2634_v39, %s2935_s7  ;;  %v1644_v37 = vsel %vm1622_vm4, %v1611_v59, %v4069_v13 }
 0x207   : > { %v4077_v11 = vpop.permute.xlu1 %1085  ;;  %v1466_v61 = vpop.permute.xlu0 %1465 }
 0x208   : > { %v1774_v30 = vsel %vm1754_vm8, %v1741_v20, %v1466_v61 }
 0x209   : > { %1103 = vrot.lane.b32.xlu1 %v2665_v45, %s2933_s28  ;;  %977 = vrot.lane.b32.xlu0 %v2634_v39, %s2932_s13  ;;  %s4111_s13 = scalar_lea.vmem %s4494_s3, %s2707_s11  ;;  %v1677_v39 = vsel %vm1655_vm5, %v1644_v37, %v4077_v11 }
 0x20a   : > { %2783 = vmatmul.mubr.msk.f32.gmra.mrb[2].mxu1 %vm1799_vm9, %v1774_v30 }
 0x20b   : > { %v4084_v40 = vpop.permute.xlu1 %831  ;;  %v1212_v53 = vpop.permute.xlu0 %1211 }
 0x20c   : > { %v1709_v25 = vsel %vm1688_vm6, %v1676_v46, %v1212_v53 }
 0x20d   : > { %1105 = vrot.lane.b32.xlu1 %v2572_v62, %s2933_s28  ;;  %1485 = vrot.lane.b32.xlu0 %v2572_v62, %s2936_s9 }
 0x20f   : > { %v1340_v2 = vpop.permute.xlu1 %1339  ;;  %v1214_v60 = vpop.permute.xlu0 %1213 }
 0x210   : > { %v1742_v52 = vsel %vm1721_vm7, %v1709_v25, %v1340_v2  ;;  %v1710_v26 = vsel %vm1688_vm6, %v1677_v39, %v1214_v60 }
 0x211   : > { %v2757_v55 = vpop.f32.mrb[0].mxu0  ;;  %1233 = vrot.lane.b32.xlu1 %v2604_v16, %s2934_s29  ;;  %1231 = vrot.lane.b32.xlu0 %v2603_v31, %s2934_s29  ;;  %v4575_v31 = vld [vmem:[#allocation18_spill] sm:$0xff] }
 0x212   : > { %v1972_v5 = vadd.f32 %v2757_v55, %v4093_v19  ;;  %v1966_v38 = vpop.f32.mrb[1].mxu0  ;;  %v1546_v2 = vsel %vm1523_vm0, %v3793_v22, %v4575_v31 }
 0x213   : > { %v1967_v1 = vadd.f32 %v4093_v19, %v1966_v38  ;;  %v960_v12 = vpop.permute.xlu1 %959  ;;  %v4114_v0 = vpop.permute.xlu0 %833  ;;  %v1579_v28 = vsel %vm1556_vm2, %v1546_v2, %v4576_v29 }
 0x214   : > { %v2126_v49 = vmax.f32 %v1972_v5, 0.0  ;;  %v1612_v55 = vsel %vm1589_vm3, %v1579_v28, %v4084_v40 }
 0x215   : > { %v2125_v50 = vmax.f32 %v1967_v1, 0.0  ;;  %1361 = vrot.lane.b32.xlu1 %v2636_v58, %s2935_s7  ;;  %1359 = vrot.lane.b32.xlu0 %v2635_v41, %s2935_s7  ;;  %v1645_v22 = vsel %vm1622_vm4, %v1612_v55, %v960_v12  ;;  %s2937_s7 = smov [#allocation2]  }
 0x216   : > { %2158 = vst.msk [vmem:[%s4111_s13 + $0x8] sm:$0xff] %vm1556_vm2, %v2126_v49  ;;  %v2190_v27 = vsel %vm1556_vm2, %v2126_v49, 0.0  ;;  %v2259_v54 = vmul.f32 %v2126_v49, %v2126_v49 }
 0x217   : > { %2157 = vst.msk [vmem:[%s4111_s13] sm:$0xff] %vm1556_vm2, %v2125_v50  ;;  %v2189_v4 = vsel %vm1556_vm2, %v2125_v50, 0.0  ;;  %v2258_v63 = vmul.f32 %v2125_v50, %v2125_v50  ;;  %v1468_v9 = vpop.permute.xlu1 %1467  ;;  %v1342_v48 = vpop.permute.xlu0 %1341 }
 0x218   : > { %v2291_v33 = vsel %vm1556_vm2, %v2259_v54, 0.0  ;;  %v2191_v3 = vadd.f32 %v2190_v27, %v2189_v4  ;;  %v1775_v43 = vsel %vm1754_vm8, %v1742_v52, %v1468_v9  ;;  %v1743_v21 = vsel %vm1721_vm7, %v1710_v26, %v1342_v48  ;;  %v4578_v4 = vld [vmem:[#allocation38_spill] sm:$0xff] }
 0x219   : > { %v2290_v35 = vsel %vm1556_vm2, %v2258_v63, 0.0  ;;  %1489 = vrot.lane.b32.xlu1 %v2668_v42, %s2936_s9  ;;  %1487 = vrot.lane.b32.xlu0 %v2667_v44, %s2936_s9  ;;  %v4577_v44 = vld [vmem:[#allocation17_spill] sm:$0xff]  ;;  %s2869_s9 = sshll.u32 %s2937_s7, 4  ;;  %s2870_s9 = int_to_ptr.vmem [resolvable:$false] %s2869_s9 }
 0x21a   : > { %v2292_v32 = vadd.f32 %v2291_v33, %v2290_v35  ;;  %2785 = vmatprep.mubr.msk.f32.mxu1 %vm1799_vm9, %v1775_v43  ;;  %v1547_v52 = vsel %vm1523_vm0, %v3810_v36, %v4577_v44  ;;  %s2871_s8 = scalar_lea.vmem %s2870_s9, 64 }
 0x21b   : > { %v1088_v57 = vpop.permute.xlu1 %1087  ;;  %v962_v45 = vpop.permute.xlu0 %961  ;;  %v1580_v63 = vsel %vm1556_vm2, %v1547_v52, %v4578_v4 }
 0x21c   : > { %v1678_v51 = vsel %vm1655_vm5, %v1645_v22, %v1088_v57  ;;  %v1613_v9 = vsel %vm1589_vm3, %v1580_v63, %v4114_v0 }
 0x21f   : > { %v1090_v15 = vpop.permute.xlu1 %1089  ;;  %v1470_v14 = vpop.permute.xlu0 %1469 }
 0x220   : > { %v1776_v17 = vsel %vm1754_vm8, %v1743_v21, %v1470_v14 }
 0x221   : > { %2786 = vmatmul.mubr.msk.f32.gmra.mrb[4].mxu1 %vm1799_vm9, %v1776_v17 }
 0x223   : > { %v4151_v23 = vpop.permute.xlu1 %835  ;;  %v1216_v20 = vpop.permute.xlu0 %1215 }
 0x224   : > { %v1711_v40 = vsel %vm1688_vm6, %v1678_v51, %v1216_v20 }
 0x225   : > { %v2760_v61 = vpop.f32.mrb[2].mxu0 }
 0x226   : > { %v1982_v13 = vadd.f32 %v2760_v61, %v4093_v19  ;;  %v1976_v30 = vpop.f32.mrb[3].mxu0  ;;  %v4579_v61 = vld [vmem:[#allocation20_spill] sm:$0xff] }
 0x227   : > { %v1977_v11 = vadd.f32 %v4093_v19, %v1976_v30  ;;  %v1344_v62 = vpop.permute.xlu1 %1343  ;;  %v1218_v53 = vpop.permute.xlu0 %1217 }
 0x228   : > { %v2128_v16 = vmax.f32 %v1982_v13, 0.0  ;;  %v1744_v25 = vsel %vm1721_vm7, %v1711_v40, %v1344_v62  ;;  %v1548_v13 = vsel %vm1523_vm0, %v3847_v34, %v4579_v61  ;;  %v4580_v62 = vld [vmem:[#allocation41_spill] sm:$0xff] }
 0x229   : > { %v2127_v60 = vmax.f32 %v1977_v11, 0.0 }
 0x22a   : > { %2160 = vst.msk [vmem:[%s4111_s13 + $0x18] sm:$0xff] %vm1556_vm2, %v2128_v16  ;;  %v2261_v24 = vmul.f32 %v2128_v16, %v2128_v16  ;;  %v2194_v1 = vsel %vm1556_vm2, %v2128_v16, 0.0 }
 0x22b   : > { %2159 = vst.msk [vmem:[%s4111_s13 + $0x10] sm:$0xff] %vm1556_vm2, %v2127_v60  ;;  %v2192_v10 = vsel %vm1556_vm2, %v2127_v60, 0.0  ;;  %v2260_v5 = vmul.f32 %v2127_v60, %v2127_v60  ;;  %v964_v38 = vpop.permute.xlu1 %963  ;;  %v4167_v58 = vpop.permute.xlu0 %837 }
 0x22c   : > { %v2193_v41 = vadd.f32 %v2192_v10, %v2191_v3  ;;  %v2295_v50 = vsel %vm1556_vm2, %v2261_v24, 0.0  ;;  %v1646_v3 = vsel %vm1622_vm4, %v1613_v9, %v962_v45 }
 0x22d   : > { %v2293_v56 = vsel %vm1556_vm2, %v2260_v5, 0.0  ;;  %v1679_v43 = vsel %vm1655_vm5, %v1646_v3, %v1090_v15 }
 0x22e   : > { %v2294_v49 = vadd.f32 %v2293_v56, %v2292_v32  ;;  %v2195_v46 = vadd.f32 %v2194_v1, %v2193_v41  ;;  %v1712_v8 = vsel %vm1688_vm6, %v1679_v43, %v1218_v53  ;;  %v1581_v53 = vsel %vm1556_vm2, %v1548_v13, %v4580_v62  ;;  %v4581_v1 = vld [vmem:[#allocation19_spill] sm:$0xff]  ;;  %v4582_v56 = vld [vmem:[#allocation40_spill] sm:$0xff] }
 0x22f   : > { %v1472_v27 = vpop.permute.xlu1 %1471  ;;  %v1346_v54 = vpop.permute.xlu0 %1345  ;;  %v1614_v2 = vsel %vm1589_vm3, %v1581_v53, %v4151_v23  ;;  %v1549_v23 = vsel %vm1523_vm0, %v3864_v47, %v4581_v1 }
 0x230   : > { %v1777_v42 = vsel %vm1754_vm8, %v1744_v25, %v1472_v27  ;;  %v2296_v12 = vadd.f32 %v2295_v50, %v2294_v49  ;;  %v1745_v36 = vsel %vm1721_vm7, %v1712_v8, %v1346_v54  ;;  %v1647_v55 = vsel %vm1622_vm4, %v1614_v2, %v964_v38  ;;  %v4585_v2 = vld [vmem:[#allocation21_spill] sm:$0xff] }
 0x231   : > { %2788 = vmatprep.mubr.msk.f32.mxu1 %vm1799_vm9, %v1777_v42  ;;  %v1582_v38 = vsel %vm1556_vm2, %v1549_v23, %v4582_v56 }
 0x232   : > { %v1615_v40 = vsel %vm1589_vm3, %v1582_v38, %v4167_v58 }
 0x233   : > { %v1092_v48 = vpop.permute.xlu1 %1091  ;;  %v966_v33 = vpop.permute.xlu0 %965 }
 0x234   : > { %v1680_v24 = vsel %vm1655_vm5, %v1647_v55, %v1092_v48  ;;  %v1648_v50 = vsel %vm1622_vm4, %v1615_v40, %v966_v33 }
 0x237   : > { %v1094_v7 = vpop.permute.xlu1 %1093  ;;  %v1474_v35 = vpop.permute.xlu0 %1473 }
 0x238   : > { %v1778_v18 = vsel %vm1754_vm8, %v1745_v36, %v1474_v35  ;;  %v1681_v25 = vsel %vm1655_vm5, %v1648_v50, %v1094_v7 }
 0x239   : > { %v2763_v6 = vpop.f32.mrb[4].mxu0  ;;  %2789 = vmatmul.mubr.msk.f32.gmra.mrb[6].mxu1 %vm1799_vm9, %v1778_v18  ;;  %v235_v18 = vld [vmem:[%s3019_s5 + $0x138] sm:$0xff] }
 0x23a   : > { %v1992_v0 = vadd.f32 %v2763_v6, %v4093_v19  ;;  %v1986_v32 = vpop.f32.mrb[5].mxu0 }
 0x23b   : > { %v1987_v59 = vadd.f32 %v4093_v19, %v1986_v32  ;;  %v4193_v57 = vpop.permute.xlu1 %839  ;;  %v1220_v45 = vpop.permute.xlu0 %1219 }
 0x23c   : > { %v2130_v37 = vmax.f32 %v1992_v0, 0.0  ;;  %v1713_v10 = vsel %vm1688_vm6, %v1680_v24, %v1220_v45 }
 0x23d   : > { %v2129_v39 = vmax.f32 %v1987_v59, 0.0 }
 0x23e   : > { %2162 = vst.msk [vmem:[%s4111_s13 + $0x28] sm:$0xff] %vm1556_vm2, %v2130_v37  ;;  %v2263_v26 = vmul.f32 %v2130_v37, %v2130_v37  ;;  %v2198_v30 = vsel %vm1556_vm2, %v2130_v37, 0.0 }
 0x23f   : > { %2161 = vst.msk [vmem:[%s4111_s13 + $0x20] sm:$0xff] %vm1556_vm2, %v2129_v39  ;;  %v2196_v21 = vsel %vm1556_vm2, %v2129_v39, 0.0  ;;  %v2262_v15 = vmul.f32 %v2129_v39, %v2129_v39  ;;  %v1348_v14 = vpop.permute.xlu1 %1347  ;;  %v1222_v17 = vpop.permute.xlu0 %1221  ;;  %v4583_v39 = vld [vmem:[#allocation22_spill] sm:$0xff] }
 0x240   : > { %v2197_v20 = vadd.f32 %v2196_v21, %v2195_v46  ;;  %v2299_v60 = vsel %vm1556_vm2, %v2263_v26, 0.0  ;;  %v1746_v5 = vsel %vm1721_vm7, %v1713_v10, %v1348_v14  ;;  %v1714_v54 = vsel %vm1688_vm6, %v1681_v25, %v1222_v17  ;;  %v4584_v21 = vld [vmem:[#allocation43_spill] sm:$0xff] }
 0x241   : > { %v2297_v11 = vsel %vm1556_vm2, %v2262_v15, 0.0  ;;  %v1550_v26 = vsel %vm1523_vm0, %v235_v18, %v4583_v39 }
 0x242   : > { %v2298_v16 = vadd.f32 %v2297_v11, %v2296_v12  ;;  %v2199_v31 = vadd.f32 %v2198_v30, %v2197_v20  ;;  %v1583_v15 = vsel %vm1556_vm2, %v1550_v26, %v4584_v21  ;;  %v236_v30 = vld [vmem:[%s3019_s5 + $0x140] sm:$0xff] }
 0x243   : > { %v968_v29 = vpop.permute.xlu1 %967  ;;  %v4210_v28 = vpop.permute.xlu0 %841  ;;  %v1616_v14 = vsel %vm1589_vm3, %v1583_v15, %v4193_v57  ;;  %v4586_v57 = vld [vmem:[#allocation42_spill] sm:$0xff]  ;;  %v4589_v15 = vld [vmem:[#allocation23_spill] sm:$0xff] }
 0x244   : > { %v2300_v34 = vadd.f32 %v2299_v60, %v2298_v16  ;;  %v1649_v61 = vsel %vm1622_vm4, %v1616_v14, %v968_v29  ;;  %v1551_v60 = vsel %vm1523_vm0, %v236_v30, %v4585_v2 }
 0x245   : > { %v1584_v55 = vsel %vm1556_vm2, %v1551_v60, %v4586_v57 }
 0x246   : > { %v1617_v29 = vsel %vm1589_vm3, %v1584_v55, %v4210_v28 }
 0x247   : > { %v1476_v22 = vpop.permute.xlu1 %1475  ;;  %v1350_v41 = vpop.permute.xlu0 %1349 }
 0x248   : > { %v1779_v51 = vsel %vm1754_vm8, %v1746_v5, %v1476_v22  ;;  %v1747_v12 = vsel %vm1721_vm7, %v1714_v54, %v1350_v41 }
 0x249   : > { %2791 = vmatprep.mubr.msk.f32.mxu1 %vm1799_vm9, %v1779_v51 }
 0x24b   : > { %v1096_v49 = vpop.permute.xlu1 %1095  ;;  %v970_v46 = vpop.permute.xlu0 %969 }
 0x24c   : > { %v1682_v13 = vsel %vm1655_vm5, %v1649_v61, %v1096_v49  ;;  %v1650_v10 = vsel %vm1622_vm4, %v1617_v29, %v970_v46 }
 0x24d   : > { %v2766_v27 = vpop.f32.mrb[6].mxu0 }
 0x24e   : > { %v2002_v47 = vadd.f32 %v2766_v27, %v4093_v19  ;;  %v1996_v42 = vpop.f32.mrb[7].mxu0 }
 0x24f   : > { %v1997_v44 = vadd.f32 %v4093_v19, %v1996_v42  ;;  %v1098_v52 = vpop.permute.xlu1 %1097  ;;  %v1478_v58 = vpop.permute.xlu0 %1477 }
 0x250   : > { %v2132_v4 = vmax.f32 %v2002_v47, 0.0  ;;  %v1780_v63 = vsel %vm1754_vm8, %v1747_v12, %v1478_v58  ;;  %v1683_v5 = vsel %vm1655_vm5, %v1650_v10, %v1098_v52  ;;  %v237_v52 = vld [vmem:[%s3019_s5 + $0x150] sm:$0xff] }
 0x251   : > { %v2131_v9 = vmax.f32 %v1997_v44, 0.0  ;;  %2792 = vmatmul.mubr.msk.f32.gmra.mrb[8].mxu1 %vm1799_vm9, %v1780_v63  ;;  %v240_v10 = vld [vmem:[%s3019_s5 + $0x170] sm:$0xff] }
 0x252   : > { %2164 = vst.msk [vmem:[%s4111_s13 + $0x38] sm:$0xff] %vm1556_vm2, %v2132_v4  ;;  %v2265_v48 = vmul.f32 %v2132_v4, %v2132_v4  ;;  %v2202_v7 = vsel %vm1556_vm2, %v2132_v4, 0.0 }
 0x253   : > { %2163 = vst.msk [vmem:[%s4111_s13 + $0x30] sm:$0xff] %vm1556_vm2, %v2131_v9  ;;  %v2200_v33 = vsel %vm1556_vm2, %v2131_v9, 0.0  ;;  %v2264_v3 = vmul.f32 %v2131_v9, %v2131_v9  ;;  %v4238_v43 = vpop.permute.xlu1 %843  ;;  %v1224_v8 = vpop.permute.xlu0 %1223 }
 0x254   : > { %v2201_v36 = vadd.f32 %v2200_v33, %v2199_v31  ;;  %v2303_v32 = vsel %vm1556_vm2, %v2265_v48, 0.0  ;;  %v1715_v11 = vsel %vm1688_vm6, %v1682_v13, %v1224_v8 }
 0x255   : > { %v2301_v35 = vsel %vm1556_vm2, %v2264_v3, 0.0  ;;  %v4587_v3 = vld [vmem:[#allocation24_spill] sm:$0xff] }
 0x256   : > { %v2302_v6 = vadd.f32 %v2301_v35, %v2300_v34  ;;  %v2203_v0 = vadd.f32 %v2202_v7, %v2201_v36  ;;  %v1552_v8 = vsel %vm1523_vm0, %v237_v52, %v4587_v3  ;;  %v4588_v36 = vld [vmem:[#allocation45_spill] sm:$0xff] }
 0x257   : > { %v1352_v59 = vpop.permute.xlu1 %1351  ;;  %v1226_v45 = vpop.permute.xlu0 %1225  ;;  %v1585_v7 = vsel %vm1556_vm2, %v1552_v8, %v4588_v36 }
 0x258   : > { %v2304_v37 = vadd.f32 %v2303_v32, %v2302_v6  ;;  %v1748_v62 = vsel %vm1721_vm7, %v1715_v11, %v1352_v59  ;;  %v1716_v41 = vsel %vm1688_vm6, %v1683_v5, %v1226_v45  ;;  %v1618_v35 = vsel %vm1589_vm3, %v1585_v7, %v4238_v43  ;;  %v238_v59 = vld [vmem:[%s3019_s5 + $0x158] sm:$0xff]  ;;  %v239_v5 = vld [vmem:[%s3019_s5 + $0x168] sm:$0xff]  ;;  %s196_s5 = sand.u32 1, %s2919_s16  }
 0x259   : > { %v1553_v14 = vsel %vm1523_vm0, %v238_v59, %v4589_v15  ;;  %v4590_v43 = vld [vmem:[#allocation44_spill] sm:$0xff]  ;;  %s2473_s14 = sshll.u32 %s196_s5, 1  ;;  %s2369_s6 = scalar_lea.sflag [#allocation3], %s196_s5 }
 0x25a   : > { %v1586_v61 = vsel %vm1556_vm2, %v1553_v14, %v4590_v43  ;;  %s198_s22 = scalar_lea.vmem [#allocation2], %s2473_s14 }
 0x25b   : > { %v972_v17 = vpop.permute.xlu1 %971  ;;  %v4250_v20 = vpop.permute.xlu0 %845  ;;  %s2385_s23 = sshll.u32 %s198_s22, 4  ;;  %s4451_s23 = int_to_ptr.vmem [resolvable:$true] %s2385_s23 }
 0x25c   : > { %s2865_s19 = scalar_lea.vmem %s4451_s23, 32  ;;  %p2872_p0 = scmp.lt.s32.totalorder %s4451_s23, %s2870_s9 }
 0x25d   : > { %p2866_p11 = scmp.ne.s32.totalorder %s4451_s23, %s2865_s19  ;;  %p2873_p1 = scmp.lt.s32.totalorder %s2871_s8, %s2865_s19 }
 0x25f   : > { %v1480_v53 = vpop.permute.xlu1 %1479  ;;  %v1354_v16 = vpop.permute.xlu0 %1353  ;;  %p2867_p12 = pnand %p2866_p11, %p3001_p5  ;;  %p2874_p2 = por %p2873_p1, %p2872_p0 }
 0x260   : > { %v1781_v31 = vsel %vm1754_vm8, %v1748_v62, %v1480_v53  ;;  %v1749_v23 = vsel %vm1721_vm7, %v1716_v41, %v1354_v16 }
 0x261   : > { %2794 = vmatprep.mubr.msk.f32.mxu1 %vm1799_vm9, %v1781_v31  ;;  %p2868_p13 = pneg %p2867_p12 }
 0x263   : > { %v1100_v34 = vpop.permute.xlu1 %1099  ;;  %v974_v24 = vpop.permute.xlu0 %973  ;;  %p2875_p3 = pnand %p2874_p2, %p2868_p13 }
 0x265   : > { %v2769_v22 = vpop.f32.mrb[8].mxu0 }
 0x266   : > { %v2012_v51 = vadd.f32 %v2769_v22, %v4093_v19  ;;  %v2006_v1 = vpop.f32.mrb[9].mxu0 }
 0x267   : > { %v2007_v56 = vadd.f32 %v4093_v19, %v2006_v1  ;;  %v1102_v38 = vpop.permute.xlu1 %1101  ;;  %v1482_v28 = vpop.permute.xlu0 %1481 }
 0x268   : > { %v2134_v40 = vmax.f32 %v2012_v51, 0.0  ;;  %v1782_v49 = vsel %vm1754_vm8, %v1749_v23, %v1482_v28 }
 0x269   : > { %v2133_v46 = vmax.f32 %v2007_v56, 0.0  ;;  %2795 = vmatmul.mubr.msk.f32.gmra.mrb[10].mxu1 %vm1799_vm9, %v1782_v49 }
 0x26a   : > { %2166 = vst.msk [vmem:[%s4111_s13 + $0x48] sm:$0xff] %vm1556_vm2, %v2134_v40  ;;  %v2267_v50 = vmul.f32 %v2134_v40, %v2134_v40  ;;  %v2206_v12 = vsel %vm1556_vm2, %v2134_v40, 0.0  ;;  %v4592_v40 = vld [vmem:[#allocation26_spill] sm:$0xff] }
 0x26b   : > { %2165 = vst.msk [vmem:[%s4111_s13 + $0x40] sm:$0xff] %vm1556_vm2, %v2133_v46  ;;  %v2204_v25 = vsel %vm1556_vm2, %v2133_v46, 0.0  ;;  %v2266_v27 = vmul.f32 %v2133_v46, %v2133_v46  ;;  %v4278_v54 = vpop.permute.xlu1 %847  ;;  %v1228_v47 = vpop.permute.xlu0 %1227  ;;  %v1554_v49 = vsel %vm1523_vm0, %v239_v5, %v4592_v40 }
 0x26c   : > { %v2205_v42 = vadd.f32 %v2204_v25, %v2203_v0  ;;  %v2307_v63 = vsel %vm1556_vm2, %v2267_v50, 0.0  ;;  %v1651_v0 = vsel %vm1622_vm4, %v1618_v35, %v972_v17  ;;  %v1619_v17 = vsel %vm1589_vm3, %v1586_v61, %v4250_v20  ;;  %v4593_v25 = vld [vmem:[#allocation46_spill] sm:$0xff] }
 0x26d   : > { %v2305_v44 = vsel %vm1556_vm2, %v2266_v27, 0.0  ;;  %v1684_v32 = vsel %vm1655_vm5, %v1651_v0, %v1100_v34  ;;  %v1652_v11 = vsel %vm1622_vm4, %v1619_v17, %v974_v24 }
 0x26e   : > { %v2306_v58 = vadd.f32 %v2305_v44, %v2304_v37  ;;  %v2207_v4 = vadd.f32 %v2206_v12, %v2205_v42  ;;  %v1717_v45 = vsel %vm1688_vm6, %v1684_v32, %v1228_v47  ;;  %v1685_v62 = vsel %vm1655_vm5, %v1652_v11, %v1102_v38  ;;  %v4591_v38 = vld [vmem:[#allocation25_spill] sm:$0xff]  ;;  %v4594_v47 = vld [vmem:[#allocation47_spill] sm:$0xff] }
 0x26f   : > { %v1356_v9 = vpop.permute.xlu1 %1355  ;;  %v1230_v48 = vpop.permute.xlu0 %1229  ;;  %v1555_v28 = vsel %vm1523_vm0, %v240_v10, %v4591_v38  ;;  %v1587_v42 = vsel %vm1556_vm2, %v1554_v49, %v4594_v47 }
 0x270   : > { %v2308_v33 = vadd.f32 %v2307_v63, %v2306_v58  ;;  %v1750_v37 = vsel %vm1721_vm7, %v1717_v45, %v1356_v9  ;;  %v1718_v16 = vsel %vm1688_vm6, %v1685_v62, %v1230_v48  ;;  %v1588_v27 = vsel %vm1556_vm2, %v1555_v28, %v4593_v25 }
 0x271   : > { %v1620_v52 = vsel %vm1589_vm3, %v1587_v42, %v4278_v54 }
 0x273   : > { %v976_v18 = vpop.permute.xlu1 %975  ;;  %v850_v6 = vpop.permute.xlu0 %849 }
 0x274   : > { %v1621_v58 = vsel %vm1589_vm3, %v1588_v27, %v850_v6  ;;  %v1653_v48 = vsel %vm1622_vm4, %v1620_v52, %v976_v18 }
 0x277   : > { %v1484_v39 = vpop.permute.xlu1 %1483  ;;  %v1358_v26 = vpop.permute.xlu0 %1357 }
 0x278   : > { %v1783_v21 = vsel %vm1754_vm8, %v1750_v37, %v1484_v39  ;;  %v1751_v60 = vsel %vm1721_vm7, %v1718_v16, %v1358_v26 }
 0x279   : > { %2797 = vmatprep.mubr.msk.f32.mxu1 %vm1799_vm9, %v1783_v21 }
 0x27b   : > { %v1104_v13 = vpop.permute.xlu1 %1103  ;;  %v978_v30 = vpop.permute.xlu0 %977 }
 0x27c   : > { %v1654_v3 = vsel %vm1622_vm4, %v1621_v58, %v978_v30  ;;  %v1686_v36 = vsel %vm1655_vm5, %v1653_v48, %v1104_v13 }
 0x27d   : > { %v2772_v53 = vpop.f32.mrb[10].mxu0 }
 0x27e   : > { %v2022_v31 = vadd.f32 %v2772_v53, %v4093_v19  ;;  %v2016_v2 = vpop.f32.mrb[11].mxu0 }
 0x27f   : > { %v2017_v20 = vadd.f32 %v4093_v19, %v2016_v2  ;;  %v1106_v57 = vpop.permute.xlu1 %1105  ;;  %v1486_v55 = vpop.permute.xlu0 %1485 }
 0x280   : > { %v2136_v29 = vmax.f32 %v2022_v31, 0.0  ;;  %v1784_v34 = vsel %vm1754_vm8, %v1751_v60, %v1486_v55  ;;  %v1687_v7 = vsel %vm1655_vm5, %v1654_v3, %v1106_v57 }
 0x281   : > { %v2135_v24 = vmax.f32 %v2017_v20, 0.0  ;;  %2798 = vmatmul.mubr.msk.f32.gmra.mrb[12].mxu1 %vm1799_vm9, %v1784_v34 }
 0x282   : > { %2168 = vst.msk [vmem:[%s4111_s13 + $0x58] sm:$0xff] %vm1556_vm2, %v2136_v29  ;;  %v2269_v22 = vmul.f32 %v2136_v29, %v2136_v29  ;;  %v2210_v46 = vsel %vm1556_vm2, %v2136_v29, 0.0 }
 0x283   : > { %2167 = vst.msk [vmem:[%s4111_s13 + $0x50] sm:$0xff] %vm1556_vm2, %v2135_v24  ;;  %v2208_v41 = vsel %vm1556_vm2, %v2135_v24, 0.0  ;;  %v2268_v51 = vmul.f32 %v2135_v24, %v2135_v24  ;;  %v1234_v1 = vpop.permute.xlu1 %1233  ;;  %v1232_v23 = vpop.permute.xlu0 %1231 }
 0x284   : > { %v2209_v56 = vadd.f32 %v2208_v41, %v2207_v4  ;;  %v2311_v4 = vsel %vm1556_vm2, %v2269_v22, 0.0  ;;  %v1719_v54 = vsel %vm1688_vm6, %v1686_v36, %v1232_v23 }
 0x285   : > { %v2309_v50 = vsel %vm1556_vm2, %v2268_v51, 0.0 }
 0x286   : > { %v2310_v12 = vadd.f32 %v2309_v50, %v2308_v33  ;;  %v2211_v44 = vadd.f32 %v2210_v46, %v2209_v56  ;;  %v1720_v33 = vsel %vm1688_vm6, %v1687_v7, %v1234_v1 }
 0x287   : > { %v1362_v63 = vpop.permute.xlu1 %1361  ;;  %v1360_v9 = vpop.permute.xlu0 %1359 }
 0x288   : > { %v2312_v8 = vadd.f32 %v2311_v4, %v2310_v12  ;;  %v1753_v35 = vsel %vm1721_vm7, %v1720_v33, %v1362_v63  ;;  %v1752_v6 = vsel %vm1721_vm7, %v1719_v54, %v1360_v9 }
 0x28b   : > { %v1490_v0 = vpop.permute.xlu1 %1489  ;;  %v1488_v32 = vpop.permute.xlu0 %1487 }
 0x28c   : > { %v1786_v18 = vsel %vm1754_vm8, %v1753_v35, %v1490_v0  ;;  %v1785_v59 = vsel %vm1754_vm8, %v1752_v6, %v1488_v32 }
 0x28d   : > { %2800 = vmatprep.mubr.msk.f32.mxu1 %vm1799_vm9, %v1785_v59 }
 0x28e   : > { %2801 = vmatmul.mubr.msk.f32.gmra.mrb[14].mxu1 %vm1799_vm9, %v1786_v18 }
 0x295   : > { %v2775_v45 = vpop.f32.mrb[12].mxu0 }
 0x296   : > { %v2032_v37 = vadd.f32 %v2775_v45, %v4093_v19  ;;  %v2026_v39 = vpop.f32.mrb[13].mxu0 }
 0x297   : > { %v2027_v26 = vadd.f32 %v4093_v19, %v2026_v39 }
 0x298   : > { %v2138_v21 = vmax.f32 %v2032_v37, 0.0 }
 0x299   : > { %v2137_v15 = vmax.f32 %v2027_v26, 0.0 }
 0x29a   : > { %2170 = vst.msk [vmem:[%s4111_s13 + $0x68] sm:$0xff] %vm1556_vm2, %v2138_v21  ;;  %v2271_v14 = vmul.f32 %v2138_v21, %v2138_v21  ;;  %v2214_v13 = vsel %vm1556_vm2, %v2138_v21, 0.0 }
 0x29b   : > { %2169 = vst.msk [vmem:[%s4111_s13 + $0x60] sm:$0xff] %vm1556_vm2, %v2137_v15  ;;  %v2212_v43 = vsel %vm1556_vm2, %v2137_v15, 0.0  ;;  %v2270_v61 = vmul.f32 %v2137_v15, %v2137_v15 }
 0x29c   : > { %v2213_v17 = vadd.f32 %v2212_v43, %v2211_v44  ;;  %v2315_v53 = vsel %vm1556_vm2, %v2271_v14, 0.0 }
 0x29d   : > { %v2313_v30 = vsel %vm1556_vm2, %v2270_v61, 0.0 }
 0x29e   : > { %v2314_v11 = vadd.f32 %v2313_v30, %v2312_v8  ;;  %v2215_v62 = vadd.f32 %v2214_v13, %v2213_v17 }
 0x2a0   : > { %v2316_v16 = vadd.f32 %v2315_v53, %v2314_v11 }
 0x2ad   : > { %v2778_v31 = vpop.f32.mrb[14].mxu0 }
 0x2ae   : > { %v2042_v2 = vadd.f32 %v2778_v31, %v4093_v19  ;;  %v2036_v60 = vpop.f32.mrb[15].mxu0 }
 0x2af   : > { %v2037_v20 = vadd.f32 %v4093_v19, %v2036_v60 }
 0x2b0   : > { %v2140_v57 = vmax.f32 %v2042_v2, 0.0 }
 0x2b1   : > { %v2139_v55 = vmax.f32 %v2037_v20, 0.0 }
 0x2b2   : > { %2172 = vst.msk [vmem:[%s4111_s13 + $0x78] sm:$0xff] %vm1556_vm2, %v2140_v57  ;;  %v2273_v29 = vmul.f32 %v2140_v57, %v2140_v57  ;;  %v2218_v5 = vsel %vm1556_vm2, %v2140_v57, 0.0 }
 0x2b3   : > { %2171 = vst.msk [vmem:[%s4111_s13 + $0x70] sm:$0xff] %vm1556_vm2, %v2139_v55  ;;  %v2216_v34 = vsel %vm1556_vm2, %v2139_v55, 0.0  ;;  %v2272_v24 = vmul.f32 %v2139_v55, %v2139_v55 }
 0x2b4   : > { %v2217_v10 = vadd.f32 %v2216_v34, %v2215_v62  ;;  %v2319_v1 = vsel %vm1556_vm2, %v2273_v29, 0.0 }
 0x2b5   : > { %v2317_v22 = vsel %vm1556_vm2, %v2272_v24, 0.0 }
 0x2b6   : > { %v2318_v41 = vadd.f32 %v2317_v22, %v2316_v16  ;;  %v2219_v51 = vadd.f32 %v2218_v5, %v2217_v10 }
 0x2b8   : > { %v2320_v23 = vadd.f32 %v2319_v1, %v2318_v41 }
 0x2c5   : > { %v2781_v56 = vpop.f32.mrb[0].mxu1 }
 0x2c6   : > { %v2052_v38 = vadd.f32 %v2781_v56, %v4093_v19  ;;  %v2046_v28 = vpop.f32.mrb[1].mxu1 }
 0x2c7   : > { %v2047_v40 = vadd.f32 %v4093_v19, %v2046_v28 }
 0x2c8   : > { %v2142_v49 = vmax.f32 %v2052_v38, 0.0 }
 0x2c9   : > { %v2141_v46 = vmax.f32 %v2047_v40, 0.0 }
 0x2ca   : > { %2174 = vst.msk [vmem:[%s4111_s13 + $0x88] sm:$0xff] %vm1556_vm2, %v2142_v49  ;;  %v2275_v50 = vmul.f32 %v2142_v49, %v2142_v49  ;;  %v2222_v42 = vsel %vm1556_vm2, %v2142_v49, 0.0 }
 0x2cb   : > { %2173 = vst.msk [vmem:[%s4111_s13 + $0x80] sm:$0xff] %vm1556_vm2, %v2141_v46  ;;  %v2220_v25 = vsel %vm1556_vm2, %v2141_v46, 0.0  ;;  %v2274_v27 = vmul.f32 %v2141_v46, %v2141_v46 }
 0x2cc   : > { %v2221_v47 = vadd.f32 %v2220_v25, %v2219_v51  ;;  %v2323_v58 = vsel %vm1556_vm2, %v2275_v50, 0.0 }
 0x2cd   : > { %v2321_v12 = vsel %vm1556_vm2, %v2274_v27, 0.0 }
 0x2ce   : > { %v2322_v44 = vadd.f32 %v2321_v12, %v2320_v23  ;;  %v2223_v52 = vadd.f32 %v2222_v42, %v2221_v47 }
 0x2d0   : > { %v2324_v4 = vadd.f32 %v2323_v58, %v2322_v44 }
 0x2dd   : > { %v2784_v63 = vpop.f32.mrb[2].mxu1 }
 0x2de   : > { %v2062_v9 = vadd.f32 %v2784_v63, %v4093_v19  ;;  %v2056_v48 = vpop.f32.mrb[3].mxu1 }
 0x2df   : > { %v2057_v3 = vadd.f32 %v4093_v19, %v2056_v48 }
 0x2e0   : > { %v2144_v8 = vmax.f32 %v2062_v9, 0.0 }
 0x2e1   : > { %v2143_v36 = vmax.f32 %v2057_v3, 0.0 }
 0x2e2   : > { %2176 = vst.msk [vmem:[%s4111_s13 + $0x98] sm:$0xff] %vm1556_vm2, %v2144_v8  ;;  %v2277_v7 = vmul.f32 %v2144_v8, %v2144_v8  ;;  %v2226_v6 = vsel %vm1556_vm2, %v2144_v8, 0.0 }
 0x2e3   : > { %2175 = vst.msk [vmem:[%s4111_s13 + $0x90] sm:$0xff] %vm1556_vm2, %v2143_v36  ;;  %v2224_v33 = vsel %vm1556_vm2, %v2143_v36, 0.0  ;;  %v2276_v54 = vmul.f32 %v2143_v36, %v2143_v36 }
 0x2e4   : > { %v2225_v35 = vadd.f32 %v2224_v33, %v2223_v52  ;;  %v2327_v59 = vsel %vm1556_vm2, %v2277_v7, 0.0 }
 0x2e5   : > { %v2325_v0 = vsel %vm1556_vm2, %v2276_v54, 0.0 }
 0x2e6   : > { %v2326_v32 = vadd.f32 %v2325_v0, %v2324_v4  ;;  %v2227_v18 = vadd.f32 %v2226_v6, %v2225_v35 }
 0x2e8   : > { %v2328_v45 = vadd.f32 %v2327_v59, %v2326_v32 }
 0x2f4   : > { %v2787_v37 = vpop.f32.mrb[4].mxu1 }
 0x2f5   : > { %v2072_v39 = vadd.f32 %v2787_v37, %v4093_v19  ;;  %v2066_v26 = vpop.f32.mrb[5].mxu1 }
 0x2f6   : > { %v2067_v21 = vadd.f32 %v4093_v19, %v2066_v26 }
 0x2f7   : > { %v2146_v15 = vmax.f32 %v2072_v39, 0.0 }
 0x2f8   : > { %v2145_v14 = vmax.f32 %v2067_v21, 0.0 }
 0x2f9   : > { %2178 = vst.msk [vmem:[%s4111_s13 + $0xa8] sm:$0xff] %vm1556_vm2, %v2146_v15  ;;  %v2279_v43 = vmul.f32 %v2146_v15, %v2146_v15  ;;  %v2230_v30 = vsel %vm1556_vm2, %v2146_v15, 0.0 }
 0x2fa   : > { %2177 = vst.msk [vmem:[%s4111_s13 + $0xa0] sm:$0xff] %vm1556_vm2, %v2145_v14  ;;  %v2228_v61 = vsel %vm1556_vm2, %v2145_v14, 0.0  ;;  %v2278_v17 = vmul.f32 %v2145_v14, %v2145_v14 }
 0x2fb   : > { %v2229_v13 = vadd.f32 %v2228_v61, %v2227_v18  ;;  %v2331_v16 = vsel %vm1556_vm2, %v2279_v43, 0.0 }
 0x2fc   : > { %v2329_v11 = vsel %vm1556_vm2, %v2278_v17, 0.0 }
 0x2fd   : > { %v2330_v62 = vadd.f32 %v2329_v11, %v2328_v45  ;;  %v2231_v53 = vadd.f32 %v2230_v30, %v2229_v13 }
 0x2ff   : > { %v2332_v31 = vadd.f32 %v2331_v16, %v2330_v62 }
 0x30c   : > { %v2790_v2 = vpop.f32.mrb[6].mxu1 }
 0x30d   : > { %v2082_v60 = vadd.f32 %v2790_v2, %v4093_v19  ;;  %v2076_v20 = vpop.f32.mrb[7].mxu1 }
 0x30e   : > { %v2077_v57 = vadd.f32 %v4093_v19, %v2076_v20 }
 0x30f   : > { %v2148_v55 = vmax.f32 %v2082_v60, 0.0 }
 0x310   : > { %v2147_v29 = vmax.f32 %v2077_v57, 0.0 }
 0x311   : > { %2180 = vst.msk [vmem:[%s4111_s13 + $0xb8] sm:$0xff] %vm1556_vm2, %v2148_v55  ;;  %v2281_v34 = vmul.f32 %v2148_v55, %v2148_v55  ;;  %v2234_v22 = vsel %vm1556_vm2, %v2148_v55, 0.0 }
 0x312   : > { %2179 = vst.msk [vmem:[%s4111_s13 + $0xb0] sm:$0xff] %vm1556_vm2, %v2147_v29  ;;  %v2232_v24 = vsel %vm1556_vm2, %v2147_v29, 0.0  ;;  %v2280_v10 = vmul.f32 %v2147_v29, %v2147_v29 }
 0x313   : > { %v2233_v5 = vadd.f32 %v2232_v24, %v2231_v53  ;;  %v2335_v23 = vsel %vm1556_vm2, %v2281_v34, 0.0 }
 0x314   : > { %v2333_v41 = vsel %vm1556_vm2, %v2280_v10, 0.0 }
 0x315   : > { %v2334_v51 = vadd.f32 %v2333_v41, %v2332_v31  ;;  %v2235_v1 = vadd.f32 %v2234_v22, %v2233_v5 }
 0x317   : > { %v2336_v56 = vadd.f32 %v2335_v23, %v2334_v51 }
 0x324   : > { %v2793_v38 = vpop.f32.mrb[8].mxu1 }
 0x325   : > { %v2092_v28 = vadd.f32 %v2793_v38, %v4093_v19  ;;  %v2086_v40 = vpop.f32.mrb[9].mxu1 }
 0x326   : > { %v2087_v49 = vadd.f32 %v4093_v19, %v2086_v40 }
 0x327   : > { %v2150_v46 = vmax.f32 %v2092_v28, 0.0 }
 0x328   : > { %v2149_v50 = vmax.f32 %v2087_v49, 0.0 }
 0x329   : > { %2182 = vst.msk [vmem:[%s4111_s13 + $0xc8] sm:$0xff] %vm1556_vm2, %v2150_v46  ;;  %v2283_v25 = vmul.f32 %v2150_v46, %v2150_v46  ;;  %v2238_v12 = vsel %vm1556_vm2, %v2150_v46, 0.0 }
 0x32a   : > { %2181 = vst.msk [vmem:[%s4111_s13 + $0xc0] sm:$0xff] %vm1556_vm2, %v2149_v50  ;;  %v2236_v27 = vsel %vm1556_vm2, %v2149_v50, 0.0  ;;  %v2282_v47 = vmul.f32 %v2149_v50, %v2149_v50 }
 0x32b   : > { %v2237_v42 = vadd.f32 %v2236_v27, %v2235_v1  ;;  %v2339_v4 = vsel %vm1556_vm2, %v2283_v25, 0.0 }
 0x32c   : > { %v2337_v44 = vsel %vm1556_vm2, %v2282_v47, 0.0 }
 0x32d   : > { %v2338_v52 = vadd.f32 %v2337_v44, %v2336_v56  ;;  %v2239_v58 = vadd.f32 %v2238_v12, %v2237_v42 }
 0x32f   : > { %v2340_v63 = vadd.f32 %v2339_v4, %v2338_v52 }
 0x33c   : > { %v2796_v9 = vpop.f32.mrb[10].mxu1 }
 0x33d   : > { %v2102_v48 = vadd.f32 %v2796_v9, %v4093_v19  ;;  %v2096_v3 = vpop.f32.mrb[11].mxu1 }
 0x33e   : > { %v2097_v8 = vadd.f32 %v4093_v19, %v2096_v3 }
 0x33f   : > { %v2152_v36 = vmax.f32 %v2102_v48, 0.0 }
 0x340   : > { %v2151_v7 = vmax.f32 %v2097_v8, 0.0 }
 0x341   : > { %2184 = vst.msk [vmem:[%s4111_s13 + $0xd8] sm:$0xff] %vm1556_vm2, %v2152_v36  ;;  %v2285_v33 = vmul.f32 %v2152_v36, %v2152_v36  ;;  %v2242_v0 = vsel %vm1556_vm2, %v2152_v36, 0.0 }
 0x342   : > { %2183 = vst.msk [vmem:[%s4111_s13 + $0xd0] sm:$0xff] %vm1556_vm2, %v2151_v7  ;;  %v2240_v54 = vsel %vm1556_vm2, %v2151_v7, 0.0  ;;  %v2284_v35 = vmul.f32 %v2151_v7, %v2151_v7 }
 0x343   : > { %v2241_v6 = vadd.f32 %v2240_v54, %v2239_v58  ;;  %v2343_v45 = vsel %vm1556_vm2, %v2285_v33, 0.0 }
 0x344   : > { %v2341_v32 = vsel %vm1556_vm2, %v2284_v35, 0.0 }
 0x345   : > { %v2342_v18 = vadd.f32 %v2341_v32, %v2340_v63  ;;  %v2243_v59 = vadd.f32 %v2242_v0, %v2241_v6 }
 0x347   : > { %v2344_v37 = vadd.f32 %v2343_v45, %v2342_v18 }
 0x354   : > { %v2799_v39 = vpop.f32.mrb[12].mxu1 }
 0x355   : > { %v2112_v26 = vadd.f32 %v2799_v39, %v4093_v19  ;;  %v2106_v21 = vpop.f32.mrb[13].mxu1 }
 0x356   : > { %v2107_v15 = vadd.f32 %v4093_v19, %v2106_v21 }
 0x357   : > { %v2154_v14 = vmax.f32 %v2112_v26, 0.0 }
 0x358   : > { %v2153_v43 = vmax.f32 %v2107_v15, 0.0 }
 0x359   : > { %2186 = vst.msk [vmem:[%s4111_s13 + $0xe8] sm:$0xff] %vm1556_vm2, %v2154_v14  ;;  %v2287_v61 = vmul.f32 %v2154_v14, %v2154_v14  ;;  %v2246_v11 = vsel %vm1556_vm2, %v2154_v14, 0.0 }
 0x35a   : > { %2185 = vst.msk [vmem:[%s4111_s13 + $0xe0] sm:$0xff] %vm1556_vm2, %v2153_v43  ;;  %v2244_v17 = vsel %vm1556_vm2, %v2153_v43, 0.0  ;;  %v2286_v13 = vmul.f32 %v2153_v43, %v2153_v43 }
 0x35b   : > { %v2245_v30 = vadd.f32 %v2244_v17, %v2243_v59  ;;  %v2347_v31 = vsel %vm1556_vm2, %v2287_v61, 0.0 }
 0x35c   : > { %v2345_v62 = vsel %vm1556_vm2, %v2286_v13, 0.0 }
 0x35d   : > { %v2346_v53 = vadd.f32 %v2345_v62, %v2344_v37  ;;  %v2247_v16 = vadd.f32 %v2246_v11, %v2245_v30 }
 0x35f   : > { %v2348_v2 = vadd.f32 %v2347_v31, %v2346_v53 }
 0x361   : > { %v2802_v60 = vpop.f32.mrb[14].mxu1 }
 0x362   : > { %v2122_v20 = vadd.f32 %v2802_v60, %v4093_v19  ;;  %v2116_v57 = vpop.f32.mrb[15].mxu1 }
 0x363   : > { %v2117_v55 = vadd.f32 %v4093_v19, %v2116_v57 }
 0x364   : > { %v2156_v29 = vmax.f32 %v2122_v20, 0.0 }
 0x365   : > { %v2155_v34 = vmax.f32 %v2117_v55, 0.0 }
 0x366   : > { %2188 = vst.msk [vmem:[%s4111_s13 + $0xf8] sm:$0xff] %vm1556_vm2, %v2156_v29  ;;  %v2289_v24 = vmul.f32 %v2156_v29, %v2156_v29  ;;  %v2250_v41 = vsel %vm1556_vm2, %v2156_v29, 0.0 }
 0x367   : > { %2187 = vst.msk [vmem:[%s4111_s13 + $0xf0] sm:$0xff] %vm1556_vm2, %v2155_v34  ;;  %v2248_v10 = vsel %vm1556_vm2, %v2155_v34, 0.0  ;;  %v2288_v5 = vmul.f32 %v2155_v34, %v2155_v34 }
 0x368   : > { %v2249_v22 = vadd.f32 %v2248_v10, %v2247_v16  ;;  %v2351_v19 = vsel %vm1556_vm2, %v2289_v24, 0.0 }
 0x369   : > { %v2349_v51 = vsel %vm1556_vm2, %v2288_v5, 0.0 }
 0x36a   : > { %v2251_v1 = vadd.f32 %v2250_v41, %v2249_v22  ;;  %v2350_v23 = vadd.f32 %v2349_v51, %v2348_v2 }
 0x36c   : > { %v2252_v56 = vrot.slane %v2251_v1, 4  ;;  %v2352_v38 = vadd.f32 %v2351_v19, %v2350_v23 }
 0x36e   : > { %v2253_v28 = vadd.f32 %v2252_v56, %v2251_v1  ;;  %v2353_v40 = vrot.slane %v2352_v38, 4 }
 0x370   : > { %v2254_v49 = vrot.slane %v2253_v28, 2  ;;  %v2354_v46 = vadd.f32 %v2353_v40, %v2352_v38 }
 0x372   : > { %v2255_v50 = vadd.f32 %v2254_v49, %v2253_v28  ;;  %v2355_v25 = vrot.slane %v2354_v46, 2 }
 0x374   : > { %v2256_v27 = vrot.slane %v2255_v50, 1  ;;  %v2356_v47 = vadd.f32 %v2355_v25, %v2354_v46 }
 0x376   : > { %v2357_v42 = vrot.slane %v2356_v47, 1  ;;  %v2257_v12 = vadd.f32 %v2256_v27, %v2255_v50 }
 0x378   : > { %v2358_v44 = vadd.f32 %v2357_v42, %v2356_v47 }
 0x37a   : > { %v2360_v52 = vsel %vm2359_vm10, %v2257_v12, %v2358_v44 }
 0x37b   : > { %2362 = vst.msk [vmem:[%s198_s22] sm:$0x3] %vm2361_vm11, %v2360_v52 }
 0x37c   : > { %2878 = shalt.err (!%p2875_p3)
}
 0x37d   : > { %s2879_s10 = scalar_lea.hbm %s4449_s30, 32  ;;  %s2883_s12 = scalar_lea.hbm %s4495_s4, 64 }
 0x37e   : > { %p2880_p4 = scmp.ne.s32.totalorder %s4449_s30, %s2879_s10  ;;  %p2884_p9 = scmp.lt.u32.totalorder %s4449_s30, %s4495_s4 }
 0x37f   : > { %p2885_p10 = scmp.lt.u32.totalorder %s2883_s12, %s2879_s10  ;;  %p2887_p12 = scmp.lt.u32.totalorder %s2879_s10, %s4449_s30 }
 0x380   : > { %p2881_p7 = pnand %p2880_p4, %p3001_p5 }
 0x381   : > { %p2886_p11 = por %p2885_p10, %p2884_p9 }
 0x382   : > { %p2882_p8 = pneg %p2881_p7 }
 0x383   : > { %p2888_p13 = por %p2887_p12, %p2886_p11 }
 0x385   : > { %p2889_p0 = pnand %p2888_p13, %p2882_p8 }
 0x387   : > { %2892 = shalt.err (!%p2889_p0)
}
 0x388   : > { %2818 = dma.vmem_to_hbm [thread:$0]  (%p3001_p5), %s4451_s23, 32, %s4449_s30, %s2369_s6  }
 0x389 PF: > { %p2824_p1 = scmp.ge.s32.totalorder %s2927_s18, 2  ;;  %s2405_s14 = sand.u32 1, %s2915_s15  }
 0x38a   : > { %s2406_s20 = scalar_lea.sflag [#allocation3], %s2405_s14 }
 0x38b   : > { %p2821_p2 = pnand %p2824_p1, %p3005_p6 }
 0x38d   : > { %2910 = dma.done.wait (!%p2821_p2), %s2406_s20, 32  }
 0x38e   : > { %2912 = vsyncadd (!%p2821_p2), %s2406_s20, 4294967264  ;;  %p15_p3 = scmp.ge.s32.totalorder %s2988_s21, 4   ;;  %s4595_s15 = smov %s2919_s16 }
 0x38f   : > { %s4596_s16 = smov %s2923_s17  ;;  %s4597_s17 = smov %s2999_s24 }
 0x390   : > { %s4598_s18 = smov %s2988_s21  ;;  %17 = sbr.rel (!%p15_p3) target bundleno = 3 (0x3), region = 81 }
 0x397   :  { %2411 = vsyncpa [#allocation3], 1 }
 0x398   :  { %2413 = vsyncpa [#allocation3 + $0x1], 1 }

</bundles_post_ra>
